<compile_context>
chip_gen: v6e
topology: v6e:2x2x1
jax: 0.10.0
libtpu: 0.0.40
codegen_flags: <defaults>
</compile_context>

<pallas_src>
import functools

import jax
import jax.numpy as jnp
from jax import lax
from jax.experimental import pallas as pl
from jax.experimental.pallas import tpu as pltpu


# ----------------------------- in-kernel helpers -----------------------------

def _mish(v):
    # mish(x) = x * tanh(softplus(x)) = x * ((1+e^x)^2 - 1) / ((1+e^x)^2 + 1)
    # One exp + one EUP reciprocal (refined by a single Newton step) instead of
    # exp + log1p + tanh.  Clamp keeps (1+e^x)^2 finite.
    e = jnp.exp(jnp.minimum(v, 30.0))
    p = 1.0 + e
    q = p * p
    d = q + 1.0
    r = pl.reciprocal(d, approx=True)
    r = r * (2.0 - d * r)          # Newton-Raphson step -> ~f32-exact 1/d
    return v * (q - 1.0) * r


def _conv1d_same(h, w_ref, b_row):
    """'same'-padded Conv1d over time.

    h: (Bb, T, Cin) f32 activations; w_ref: (K, Cin, Cout); b_row: (1, Cout).
    Zero-pads the time axis once, casts to the matmul dtype once, then
    accumulates K shifted (Bb*T, Cin) x (Cin, Cout) matmuls (f32 accumulation).
    """
    Bb, T, Cin = h.shape
    K, _, Cout = w_ref.shape
    half = K // 2
    w_dtype = w_ref.dtype
    hp = h.astype(w_dtype)
    if half > 0:
        z = jnp.zeros((Bb, half, Cin), w_dtype)
        hp = jnp.concatenate([z, hp, z], axis=1)          # (Bb, T + 2*half, Cin)
    acc = jnp.zeros((Bb * T, Cout), jnp.float32)
    for k in range(K):
        hk = hp[:, k:k + T, :].reshape(Bb * T, Cin)
        acc = acc + jnp.dot(hk, w_ref[k], preferred_element_type=jnp.float32)
    return acc.reshape(Bb, T, Cout) + b_row


def _group_norm(h, gamma_row, beta_row, gmat, gmat_t, eps=1e-5):
    """GroupNorm over (channels-in-group, time), per sample.

    h: (Bb, T, C); gmat: (G, C) / gmat_t: (C, G) constant group-membership
    masks (precomputed in the wrapper -- not rebuilt per grid step).
    """
    Bb, T, C = h.shape
    G = gmat.shape[0]
    inv_n = 1.0 / float((C // G) * T)
    s = jnp.sum(h, axis=1)                                   # (Bb, C)
    ss = jnp.sum(h * h, axis=1)                              # (Bb, C)
    mean_g = jnp.dot(s, gmat_t, preferred_element_type=jnp.float32) * inv_n   # (Bb, G)
    msq_g = jnp.dot(ss, gmat_t, preferred_element_type=jnp.float32) * inv_n   # (Bb, G)
    var_g = jnp.maximum(msq_g - mean_g * mean_g, 0.0)        # clamp one-pass variance
    inv_g = lax.rsqrt(var_g + eps)
    mean_c = jnp.dot(mean_g, gmat, preferred_element_type=jnp.float32)        # (Bb, C)
    inv_c = jnp.dot(inv_g, gmat, preferred_element_type=jnp.float32)          # (Bb, C)
    scaled_inv = inv_c * gamma_row                           # fold gamma once per sample
    return (h - mean_c[:, None, :]) * scaled_inv[:, None, :] + beta_row


# --------------------------------- kernel ------------------------------------

def _cond_res_block_kernel(x_ref, cond_ref,
                           w1_ref, b1_ref, g1_ref, be1_ref,
                           wcs_ref, bcs_ref, wcb_ref, bcb_ref,
                           w2_ref, b2_ref, g2_ref, be2_ref,
                           wr_ref, br_ref,
                           gmat_ref, gmatt_ref,
                           out_ref,
                           *, cond_predict_scale):
    Bb, T, Cin = x_ref.shape
    Cout = out_ref.shape[2]

    x = x_ref[...].astype(jnp.float32)                       # (Bb, T, Cin)
    gmat = gmat_ref[...]
    gmat_t = gmatt_ref[...]

    # blocks[0]: Conv1d('same') -> GroupNorm -> Mish
    h = _conv1d_same(x, w1_ref, b1_ref[...])
    h = _mish(_group_norm(h, g1_ref[...], be1_ref[...], gmat, gmat_t))

    # cond_encoder: Mish -> Linear (weights pre-split into scale/bias halves),
    # computed for the whole batch block at once, broadcast over time.
    cond = _mish(cond_ref[...].reshape(Bb, cond_ref.shape[2]).astype(jnp.float32))
    cm = cond.astype(wcb_ref.dtype)
    if cond_predict_scale:
        scale = jnp.dot(cm, wcs_ref[...], preferred_element_type=jnp.float32) + bcs_ref[...]
        bias = jnp.dot(cm, wcb_ref[...], preferred_element_type=jnp.float32) + bcb_ref[...]
        h = scale[:, None, :] * h + bias[:, None, :]
    else:
        emb = jnp.dot(cm, wcb_ref[...], preferred_element_type=jnp.float32) + bcb_ref[...]
        h = h + emb[:, None, :]

    # blocks[1]: Conv1d('same') -> GroupNorm -> Mish
    h = _conv1d_same(h, w2_ref, b2_ref[...])
    h = _mish(_group_norm(h, g2_ref[...], be2_ref[...], gmat, gmat_t))

    # residual 1x1 conv on the flattened (Bb*T, Cin) tile
    res = jnp.dot(x.reshape(Bb * T, Cin).astype(wr_ref.dtype), wr_ref[...],
                  preferred_element_type=jnp.float32).reshape(Bb, T, Cout) + br_ref[...]

    out_ref[...] = (h + res).astype(out_ref.dtype)


# --------------------------------- wrapper ------------------------------------

def _pick_batch_block(B, T, target_rows=256, max_rows=2048):
    """Largest-useful divisor of B so that Bb*T reaches ~256 rows (MXU M-dim)."""
    best = 1
    for bb in range(1, B + 1):
        if B % bb:
            continue
        if bb * T <= max_rows:
            best = bb
        if bb * T >= target_rows:
            break
    return best


def conditional_residual_block_1d(x_nct, cond, params, *, n_groups,
                                  cond_predict_scale,
                                  compute_dtype=jnp.float32,
                                  batch_block=None,
                                  vmem_limit_bytes=None):
    B, Cin, T = x_nct.shape
    K, _, Cout = params["w1"].shape
    cond_dim = cond.shape[1]
    assert K % 2 == 1, "'same' padding matches PyTorch only for odd kernel_size"
    assert Cout % n_groups == 0

    Bb = _pick_batch_block(B, T) if batch_block is None else batch_block
    assert B % Bb == 0

    f32 = jnp.float32
    cd = compute_dtype

    x_btc = jnp.transpose(x_nct, (0, 2, 1)).astype(f32)       # (B, T, Cin)
    cond3 = cond[:, None, :].astype(f32)                      # (B, 1, cond_dim)

    # Split cond-encoder weights so the kernel never slices at a non-aligned
    # lane offset (PyTorch order: first Cout outputs = scale, second = bias).
    wc, bc = params["wc"], params["bc"]
    if cond_predict_scale:
        wcs, wcb = wc[:, :Cout], wc[:, Cout:]
        bcs, bcb = bc[:Cout], bc[Cout:]
    else:
        wcs = jnp.zeros((cond_dim, Cout), f32)
        bcs = jnp.zeros((Cout,), f32)
        wcb, bcb = wc, bc

    # Residual 1x1 conv (Identity when in_channels == out_channels).
    if "wr" in params:
        wr, br = params["wr"], params["br"]
    else:
        assert Cin == Cout
        wr = jnp.eye(Cout, dtype=f32)
        br = jnp.zeros((Cout,), f32)

    # Constant GroupNorm group-membership masks (computed once, DMA'd once).
    cg = Cout // n_groups
    ch_group = jnp.arange(Cout) // cg
    gmat = (ch_group[None, :] == jnp.arange(n_groups)[:, None]).astype(f32)   # (G, C)
    gmat_t = gmat.T                                                           # (C, G)

    def row(v):       # (C,) -> (1, C) f32
        return v.astype(f32)[None, :]

    kernel = functools.partial(_cond_res_block_kernel,
                               cond_predict_scale=cond_predict_scale)

    def full_spec(shape):
        n = len(shape)
        return pl.BlockSpec(shape, lambda b, _n=n: (0,) * _n)

    in_specs = [
        pl.BlockSpec((Bb, T, Cin), lambda b: (b, 0, 0)),        # x (time-major)
        pl.BlockSpec((Bb, 1, cond_dim), lambda b: (b, 0, 0)),   # cond
        full_spec((K, Cin, Cout)),        # conv1 weight
        full_spec((1, Cout)),             # conv1 bias
        full_spec((1, Cout)),             # gn1 gamma
        full_spec((1, Cout)),             # gn1 beta
        full_spec((cond_dim, Cout)),      # cond scale weight
        full_spec((1, Cout)),             # cond scale bias
        full_spec((cond_dim, Cout)),      # cond bias weight
        full_spec((1, Cout)),             # cond bias bias
        full_spec((K, Cout, Cout)),       # conv2 weight
        full_spec((1, Cout)),             # conv2 bias
        full_spec((1, Cout)),             # gn2 gamma
        full_spec((1, Cout)),             # gn2 beta
        full_spec((Cin, Cout)),           # residual 1x1 weight
        full_spec((1, Cout)),             # residual bias
        full_spec((n_groups, Cout)),      # GN group mask (G, C)
        full_spec((Cout, n_groups)),      # GN group mask transposed (C, G)
    ]

    out = pl.pallas_call(
        kernel,
        out_shape=jax.ShapeDtypeStruct((B, T, Cout), f32),
        grid_spec=pltpu.PrefetchScalarGridSpec(
            num_scalar_prefetch=0,
            grid=(B // Bb,),
            in_specs=in_specs,
            out_specs=pl.BlockSpec((Bb, T, Cout), lambda b: (b, 0, 0)),
        ),
        compiler_params=pltpu.CompilerParams(
            dimension_semantics=("parallel",),          # batch steps independent
            vmem_limit_bytes=vmem_limit_bytes,          # set for production sizes (v7x!)
        ),
    )(x_btc, cond3,
      params["w1"].astype(cd), row(params["b1"]), row(params["g1"]), row(params["be1"]),
      wcs.astype(cd), row(bcs), wcb.astype(cd), row(bcb),
      params["w2"].astype(cd), row(params["b2"]), row(params["g2"]), row(params["be2"]),
      wr.astype(cd), row(br),
      gmat, gmat_t)

    return jnp.transpose(out, (0, 2, 1))                # (B, Cout, T) -- PyTorch convention


# ------------------------------ pure-JAX reference ----------------------------

def ref_forward(x_nct, cond, params, *, n_groups, cond_predict_scale, eps=1e-5):
    def mish(v):
        return v * jnp.tanh(jnp.log1p(jnp.exp(v)))

    def conv_same(h_btc, w, b):  # w: (K, Cin, Cout)
        K = w.shape[0]
        half = K // 2
        T = h_btc.shape[1]
        hp = jnp.pad(h_btc, ((0, 0), (half, half), (0, 0)))
        out = sum(jnp.einsum('btc,cd->btd', hp[:, k:k + T, :], w[k]) for k in range(K))
        return out + b

    def gn(h_btc, gamma, beta):
        B, T, C = h_btc.shape
        cg = C // n_groups
        hg = h_btc.reshape(B, T, n_groups, cg)
        mean = hg.mean(axis=(1, 3), keepdims=True)
        var = hg.var(axis=(1, 3), keepdims=True)
        hn = ((hg - mean) / jnp.sqrt(var + eps)).reshape(B, T, C)
        return hn * gamma + beta

    x_btc = jnp.transpose(x_nct, (0, 2, 1))
    Cout = params["w2"].shape[2]
    h = mish(gn(conv_same(x_btc, params["w1"], params["b1"]), params["g1"], params["be1"]))
    embed = mish(cond) @ params["wc"] + params["bc"]
    if cond_predict_scale:
        h = embed[:, None, :Cout] * h + embed[:, None, Cout:]
    else:
        h = h + embed[:, None, :]
    h = mish(gn(conv_same(h, params["w2"], params["b2"]), params["g2"], params["be2"]))
    res = jnp.einsum('btc,cd->btd', x_btc, params["wr"]) + params["br"]
    return jnp.transpose(h + res, (0, 2, 1))


# ----------------------------------- main --------------------------------------

if __name__ == "__main__":
    B, Cin, Cout, T, cond_dim, K, G = 2, 4, 8, 16, 8, 3, 4
    cond_predict_scale = True
    cond_channels = Cout * 2 if cond_predict_scale else Cout

    key = jax.random.PRNGKey(0)
    keys = jax.random.split(key, 16)

    def init(k, shape, s=0.2):
        return s * jax.random.normal(k, shape, jnp.float32)

    params = {
        "w1": init(keys[0], (K, Cin, Cout)),
        "b1": init(keys[1], (Cout,)),
        "g1": 1.0 + init(keys[2], (Cout,), 0.05),
        "be1": init(keys[3], (Cout,), 0.05),
        "wc": init(keys[4], (cond_dim, cond_channels)),
        "bc": init(keys[5], (cond_channels,)),
        "w2": init(keys[6], (K, Cout, Cout)),
        "b2": init(keys[7], (Cout,)),
        "g2": 1.0 + init(keys[8], (Cout,), 0.05),
        "be2": init(keys[9], (Cout,), 0.05),
        "wr": init(keys[10], (Cin, Cout)),
        "br": init(keys[11], (Cout,)),
    }
    x = init(keys[12], (B, Cin, T), 1.0)        # [batch, in_channels, horizon]
    cond = init(keys[13], (B, cond_dim), 1.0)   # [batch, cond_dim]

    ref = ref_forward(x, cond, params, n_groups=G, cond_predict_scale=cond_predict_scale)

    # f32 matmul operands: bit-faithful to the PyTorch module (tight tolerance).
    out = conditional_residual_block_1d(
        x, cond, params, n_groups=G, cond_predict_scale=cond_predict_scale,
        compute_dtype=jnp.float32)
    out = jax.block_until_ready(out)
    assert out.shape == (B, Cout, T), out.shape
    max_err = float(jnp.max(jnp.abs(out - ref)))
    assert jnp.allclose(out, ref, atol=2e-3, rtol=2e-3), f"f32 max_err={max_err}"

    # bf16 matmul operands (production-perf path: 2x MXU throughput, half the
    # weight VMEM/HBM footprint); f32 accumulation, looser tolerance.
    out_bf16 = conditional_residual_block_1d(
        x, cond, params, n_groups=G, cond_predict_scale=cond_predict_scale,
        compute_dtype=jnp.bfloat16)
    out_bf16 = jax.block_until_ready(out_bf16)
    max_err16 = float(jnp.max(jnp.abs(out_bf16 - ref)))
    assert jnp.allclose(out_bf16, ref, atol=5e-2, rtol=5e-2), f"bf16 max_err={max_err16}"

    print("KERNEL_OK")
</pallas_src>

<mosaic_0001>
module attributes {stable_mosaic.version = 11 : i64} {
  func.func @_cond_res_block_kernel(%arg0: i32, %arg1: memref<2x16x4xf32, #tpu.memory_space<vmem>>, %arg2: memref<2x1x8xf32, #tpu.memory_space<vmem>>, %arg3: memref<3x4x8xf32, #tpu.memory_space<vmem>>, %arg4: memref<1x8xf32, #tpu.memory_space<vmem>>, %arg5: memref<1x8xf32, #tpu.memory_space<vmem>>, %arg6: memref<1x8xf32, #tpu.memory_space<vmem>>, %arg7: memref<8x8xf32, #tpu.memory_space<vmem>>, %arg8: memref<1x8xf32, #tpu.memory_space<vmem>>, %arg9: memref<8x8xf32, #tpu.memory_space<vmem>>, %arg10: memref<1x8xf32, #tpu.memory_space<vmem>>, %arg11: memref<3x8x8xf32, #tpu.memory_space<vmem>>, %arg12: memref<1x8xf32, #tpu.memory_space<vmem>>, %arg13: memref<1x8xf32, #tpu.memory_space<vmem>>, %arg14: memref<1x8xf32, #tpu.memory_space<vmem>>, %arg15: memref<4x8xf32, #tpu.memory_space<vmem>>, %arg16: memref<1x8xf32, #tpu.memory_space<vmem>>, %arg17: memref<4x8xf32, #tpu.memory_space<vmem>>, %arg18: memref<8x4xf32, #tpu.memory_space<vmem>>, %arg19: memref<2x16x8xf32, #tpu.memory_space<vmem>>) attributes {dimension_semantics = [#tpu.dimension_semantics<parallel>], iteration_bounds = array<i64: 1>, scalar_prefetch = 0 : i64, scratch_operands = 0 : i64, tpu.core_type = #tpu.core_type<tc>, window_params = [{transform_indices = @transform_0, window_bounds = array<i64: 2, 16, 4>}, {transform_indices = @transform_1, window_bounds = array<i64: 2, 1, 8>}, {pipeline_mode = #tpu.pipeline_mode<synchronous>, transform_indices = @transform_2, window_bounds = array<i64: 3, 4, 8>}, {pipeline_mode = #tpu.pipeline_mode<synchronous>, transform_indices = @transform_3, window_bounds = array<i64: 1, 8>}, {pipeline_mode = #tpu.pipeline_mode<synchronous>, transform_indices = @transform_4, window_bounds = array<i64: 1, 8>}, {pipeline_mode = #tpu.pipeline_mode<synchronous>, transform_indices = @transform_5, window_bounds = array<i64: 1, 8>}, {pipeline_mode = #tpu.pipeline_mode<synchronous>, transform_indices = @transform_6, window_bounds = array<i64: 8, 8>}, {pipeline_mode = #tpu.pipeline_mode<synchronous>, transform_indices = @transform_7, window_bounds = array<i64: 1, 8>}, {pipeline_mode = #tpu.pipeline_mode<synchronous>, transform_indices = @transform_8, window_bounds = array<i64: 8, 8>}, {pipeline_mode = #tpu.pipeline_mode<synchronous>, transform_indices = @transform_9, window_bounds = array<i64: 1, 8>}, {pipeline_mode = #tpu.pipeline_mode<synchronous>, transform_indices = @transform_10, window_bounds = array<i64: 3, 8, 8>}, {pipeline_mode = #tpu.pipeline_mode<synchronous>, transform_indices = @transform_11, window_bounds = array<i64: 1, 8>}, {pipeline_mode = #tpu.pipeline_mode<synchronous>, transform_indices = @transform_12, window_bounds = array<i64: 1, 8>}, {pipeline_mode = #tpu.pipeline_mode<synchronous>, transform_indices = @transform_13, window_bounds = array<i64: 1, 8>}, {pipeline_mode = #tpu.pipeline_mode<synchronous>, transform_indices = @transform_14, window_bounds = array<i64: 4, 8>}, {pipeline_mode = #tpu.pipeline_mode<synchronous>, transform_indices = @transform_15, window_bounds = array<i64: 1, 8>}, {pipeline_mode = #tpu.pipeline_mode<synchronous>, transform_indices = @transform_16, window_bounds = array<i64: 4, 8>}, {pipeline_mode = #tpu.pipeline_mode<synchronous>, transform_indices = @transform_17, window_bounds = array<i64: 8, 4>}, {transform_indices = @transform_18, window_bounds = array<i64: 2, 16, 8>}]} {
    %c0 = arith.constant 0 : index
    %c0_0 = arith.constant 0 : index
    %c0_1 = arith.constant 0 : index
    %0 = vector.load %arg1[%c0, %c0_0, %c0_1] : memref<2x16x4xf32, #tpu.memory_space<vmem>>, vector<2x16x4xf32>
    %c0_2 = arith.constant 0 : index
    %c0_3 = arith.constant 0 : index
    %1 = vector.load %arg17[%c0_2, %c0_3] : memref<4x8xf32, #tpu.memory_space<vmem>>, vector<4x8xf32>
    %c0_4 = arith.constant 0 : index
    %c0_5 = arith.constant 0 : index
    %2 = vector.load %arg18[%c0_4, %c0_5] : memref<8x4xf32, #tpu.memory_space<vmem>>, vector<8x4xf32>
    %c0_6 = arith.constant 0 : index
    %c0_7 = arith.constant 0 : index
    %3 = vector.load %arg4[%c0_6, %c0_7] : memref<1x8xf32, #tpu.memory_space<vmem>>, vector<1x8xf32>
    %cst = arith.constant 0.000000e+00 : f32
    %4 = vector.broadcast %cst : f32 to vector<2x1x4xf32>
    %5 = tpu.concatenate %4, %0, %4 in 1 : vector<2x1x4xf32>, vector<2x16x4xf32>, vector<2x1x4xf32> -> vector<2x18x4xf32>
    %cst_8 = arith.constant 0.000000e+00 : f32
    %6 = vector.broadcast %cst_8 : f32 to vector<32x8xf32>
    %7 = vector.extract_strided_slice %5 {offsets = [0, 0, 0], sizes = [2, 16, 4], strides = [1, 1, 1]} : vector<2x18x4xf32> to vector<2x16x4xf32>
    %8 = vector.shape_cast %7 : vector<2x16x4xf32> to vector<32x4xf32>
    %c0_9 = arith.constant 0 : index
    %c0_10 = arith.constant 0 : index
    %c0_11 = arith.constant 0 : index
    %9 = vector.load %arg3[%c0_9, %c0_10, %c0_11] : memref<3x4x8xf32, #tpu.memory_space<vmem>>, vector<1x4x8xf32>
    %10 = vector.shape_cast %9 : vector<1x4x8xf32> to vector<4x8xf32>
    %cst_12 = arith.constant dense<0.000000e+00> : vector<32x8xf32>
    %11 = tpu.matmul %8, %10, %cst_12 {dimension_numbers = #tpu.dot_dimension_numbers<[1], [0], [0], [1], [0, 0, 1, 1], [], []>} : vector<32x4xf32>, vector<4x8xf32>, vector<32x8xf32> -> vector<32x8xf32>
    %12 = arith.addf %6, %11 : vector<32x8xf32>
    %13 = vector.extract_strided_slice %5 {offsets = [0, 1, 0], sizes = [2, 16, 4], strides = [1, 1, 1]} : vector<2x18x4xf32> to vector<2x16x4xf32>
    %14 = vector.shape_cast %13 : vector<2x16x4xf32> to vector<32x4xf32>
    %c1 = arith.constant 1 : index
    %c0_13 = arith.constant 0 : index
    %c0_14 = arith.constant 0 : index
    %15 = vector.load %arg3[%c1, %c0_13, %c0_14] : memref<3x4x8xf32, #tpu.memory_space<vmem>>, vector<1x4x8xf32>
    %16 = vector.shape_cast %15 : vector<1x4x8xf32> to vector<4x8xf32>
    %cst_15 = arith.constant dense<0.000000e+00> : vector<32x8xf32>
    %17 = tpu.matmul %14, %16, %cst_15 {dimension_numbers = #tpu.dot_dimension_numbers<[1], [0], [0], [1], [0, 0, 1, 1], [], []>} : vector<32x4xf32>, vector<4x8xf32>, vector<32x8xf32> -> vector<32x8xf32>
    %18 = arith.addf %12, %17 : vector<32x8xf32>
    %19 = vector.extract_strided_slice %5 {offsets = [0, 2, 0], sizes = [2, 16, 4], strides = [1, 1, 1]} : vector<2x18x4xf32> to vector<2x16x4xf32>
    %20 = vector.shape_cast %19 : vector<2x16x4xf32> to vector<32x4xf32>
    %c2 = arith.constant 2 : index
    %c0_16 = arith.constant 0 : index
    %c0_17 = arith.constant 0 : index
    %21 = vector.load %arg3[%c2, %c0_16, %c0_17] : memref<3x4x8xf32, #tpu.memory_space<vmem>>, vector<1x4x8xf32>
    %22 = vector.shape_cast %21 : vector<1x4x8xf32> to vector<4x8xf32>
    %cst_18 = arith.constant dense<0.000000e+00> : vector<32x8xf32>
    %23 = tpu.matmul %20, %22, %cst_18 {dimension_numbers = #tpu.dot_dimension_numbers<[1], [0], [0], [1], [0, 0, 1, 1], [], []>} : vector<32x4xf32>, vector<4x8xf32>, vector<32x8xf32> -> vector<32x8xf32>
    %24 = arith.addf %18, %23 : vector<32x8xf32>
    %25 = vector.shape_cast %24 : vector<32x8xf32> to vector<2x16x8xf32>
    %26 = vector.shape_cast %3 : vector<1x8xf32> to vector<1x1x8xf32>
    %27 = vector.broadcast %26 : vector<1x1x8xf32> to vector<2x16x8xf32>
    %28 = arith.addf %25, %27 : vector<2x16x8xf32>
    %c0_19 = arith.constant 0 : index
    %c0_20 = arith.constant 0 : index
    %29 = vector.load %arg5[%c0_19, %c0_20] : memref<1x8xf32, #tpu.memory_space<vmem>>, vector<1x8xf32>
    %c0_21 = arith.constant 0 : index
    %c0_22 = arith.constant 0 : index
    %30 = vector.load %arg6[%c0_21, %c0_22] : memref<1x8xf32, #tpu.memory_space<vmem>>, vector<1x8xf32>
    %cst_23 = arith.constant dense<0.000000e+00> : vector<2x8xf32>
    %31 = vector.multi_reduction <add>, %28, %cst_23 [1] : vector<2x16x8xf32> to vector<2x8xf32>
    %32 = arith.mulf %28, %28 : vector<2x16x8xf32>
    %cst_24 = arith.constant dense<0.000000e+00> : vector<2x8xf32>
    %33 = vector.multi_reduction <add>, %32, %cst_24 [1] : vector<2x16x8xf32> to vector<2x8xf32>
    %cst_25 = arith.constant dense<0.000000e+00> : vector<2x4xf32>
    %34 = tpu.matmul %31, %2, %cst_25 {dimension_numbers = #tpu.dot_dimension_numbers<[1], [0], [0], [1], [0, 0, 1, 1], [], []>} : vector<2x8xf32>, vector<8x4xf32>, vector<2x4xf32> -> vector<2x4xf32>
    %cst_26 = arith.constant 3.125000e-02 : f32
    %35 = vector.broadcast %cst_26 : f32 to vector<2x4xf32>
    %36 = arith.mulf %34, %35 : vector<2x4xf32>
    %cst_27 = arith.constant dense<0.000000e+00> : vector<2x4xf32>
    %37 = tpu.matmul %33, %2, %cst_27 {dimension_numbers = #tpu.dot_dimension_numbers<[1], [0], [0], [1], [0, 0, 1, 1], [], []>} : vector<2x8xf32>, vector<8x4xf32>, vector<2x4xf32> -> vector<2x4xf32>
    %cst_28 = arith.constant 3.125000e-02 : f32
    %38 = vector.broadcast %cst_28 : f32 to vector<2x4xf32>
    %39 = arith.mulf %37, %38 : vector<2x4xf32>
    %40 = arith.mulf %36, %36 : vector<2x4xf32>
    %41 = arith.subf %39, %40 : vector<2x4xf32>
    %cst_29 = arith.constant 0.000000e+00 : f32
    %42 = vector.broadcast %cst_29 : f32 to vector<2x4xf32>
    %43 = arith.maximumf %41, %42 : vector<2x4xf32>
    %cst_30 = arith.constant 9.99999974E-6 : f32
    %44 = vector.broadcast %cst_30 : f32 to vector<2x4xf32>
    %45 = arith.addf %43, %44 : vector<2x4xf32>
    %46 = math.rsqrt %45 : vector<2x4xf32>
    %cst_31 = arith.constant dense<0.000000e+00> : vector<2x8xf32>
    %47 = tpu.matmul %36, %1, %cst_31 {dimension_numbers = #tpu.dot_dimension_numbers<[1], [0], [0], [1], [0, 0, 1, 1], [], []>} : vector<2x4xf32>, vector<4x8xf32>, vector<2x8xf32> -> vector<2x8xf32>
    %cst_32 = arith.constant dense<0.000000e+00> : vector<2x8xf32>
    %48 = tpu.matmul %46, %1, %cst_32 {dimension_numbers = #tpu.dot_dimension_numbers<[1], [0], [0], [1], [0, 0, 1, 1], [], []>} : vector<2x4xf32>, vector<4x8xf32>, vector<2x8xf32> -> vector<2x8xf32>
    %49 = vector.broadcast %29 : vector<1x8xf32> to vector<2x8xf32>
    %50 = arith.mulf %48, %49 : vector<2x8xf32>
    %51 = vector.shape_cast %47 : vector<2x8xf32> to vector<2x1x8xf32>
    %52 = vector.broadcast %51 : vector<2x1x8xf32> to vector<2x16x8xf32>
    %53 = arith.subf %28, %52 : vector<2x16x8xf32>
    %54 = vector.shape_cast %50 : vector<2x8xf32> to vector<2x1x8xf32>
    %55 = vector.broadcast %54 : vector<2x1x8xf32> to vector<2x16x8xf32>
    %56 = arith.mulf %53, %55 : vector<2x16x8xf32>
    %57 = vector.shape_cast %30 : vector<1x8xf32> to vector<1x1x8xf32>
    %58 = vector.broadcast %57 : vector<1x1x8xf32> to vector<2x16x8xf32>
    %59 = arith.addf %56, %58 : vector<2x16x8xf32>
    %cst_33 = arith.constant 3.000000e+01 : f32
    %60 = vector.broadcast %cst_33 : f32 to vector<2x16x8xf32>
    %61 = arith.minimumf %59, %60 : vector<2x16x8xf32>
    %62 = math.exp %61 : vector<2x16x8xf32>
    %cst_34 = arith.constant 1.000000e+00 : f32
    %63 = vector.broadcast %cst_34 : f32 to vector<2x16x8xf32>
    %64 = arith.addf %63, %62 : vector<2x16x8xf32>
    %65 = arith.mulf %64, %64 : vector<2x16x8xf32>
    %cst_35 = arith.constant 1.000000e+00 : f32
    %66 = vector.broadcast %cst_35 : f32 to vector<2x16x8xf32>
    %67 = arith.addf %65, %66 : vector<2x16x8xf32>
    %68 = tpu.reciprocal %67 {approx = true} : vector<2x16x8xf32> -> vector<2x16x8xf32>
    %69 = arith.mulf %67, %68 : vector<2x16x8xf32>
    %cst_36 = arith.constant 2.000000e+00 : f32
    %70 = vector.broadcast %cst_36 : f32 to vector<2x16x8xf32>
    %71 = arith.subf %70, %69 : vector<2x16x8xf32>
    %72 = arith.mulf %68, %71 : vector<2x16x8xf32>
    %cst_37 = arith.constant 1.000000e+00 : f32
    %73 = vector.broadcast %cst_37 : f32 to vector<2x16x8xf32>
    %74 = arith.subf %65, %73 : vector<2x16x8xf32>
    %75 = arith.mulf %59, %74 : vector<2x16x8xf32>
    %76 = arith.mulf %75, %72 : vector<2x16x8xf32>
    %c0_38 = arith.constant 0 : index
    %c0_39 = arith.constant 0 : index
    %c0_40 = arith.constant 0 : index
    %77 = vector.load %arg2[%c0_38, %c0_39, %c0_40] : memref<2x1x8xf32, #tpu.memory_space<vmem>>, vector<2x1x8xf32>
    %78 = vector.shape_cast %77 : vector<2x1x8xf32> to vector<2x8xf32>
    %cst_41 = arith.constant 3.000000e+01 : f32
    %79 = vector.broadcast %cst_41 : f32 to vector<2x8xf32>
    %80 = arith.minimumf %78, %79 : vector<2x8xf32>
    %81 = math.exp %80 : vector<2x8xf32>
    %cst_42 = arith.constant 1.000000e+00 : f32
    %82 = vector.broadcast %cst_42 : f32 to vector<2x8xf32>
    %83 = arith.addf %82, %81 : vector<2x8xf32>
    %84 = arith.mulf %83, %83 : vector<2x8xf32>
    %cst_43 = arith.constant 1.000000e+00 : f32
    %85 = vector.broadcast %cst_43 : f32 to vector<2x8xf32>
    %86 = arith.addf %84, %85 : vector<2x8xf32>
    %87 = tpu.reciprocal %86 {approx = true} : vector<2x8xf32> -> vector<2x8xf32>
    %88 = arith.mulf %86, %87 : vector<2x8xf32>
    %cst_44 = arith.constant 2.000000e+00 : f32
    %89 = vector.broadcast %cst_44 : f32 to vector<2x8xf32>
    %90 = arith.subf %89, %88 : vector<2x8xf32>
    %91 = arith.mulf %87, %90 : vector<2x8xf32>
    %cst_45 = arith.constant 1.000000e+00 : f32
    %92 = vector.broadcast %cst_45 : f32 to vector<2x8xf32>
    %93 = arith.subf %84, %92 : vector<2x8xf32>
    %94 = arith.mulf %78, %93 : vector<2x8xf32>
    %95 = arith.mulf %94, %91 : vector<2x8xf32>
    %c0_46 = arith.constant 0 : index
    %c0_47 = arith.constant 0 : index
    %96 = vector.load %arg7[%c0_46, %c0_47] : memref<8x8xf32, #tpu.memory_space<vmem>>, vector<8x8xf32>
    %cst_48 = arith.constant dense<0.000000e+00> : vector<2x8xf32>
    %97 = tpu.matmul %95, %96, %cst_48 {dimension_numbers = #tpu.dot_dimension_numbers<[1], [0], [0], [1], [0, 0, 1, 1], [], []>} : vector<2x8xf32>, vector<8x8xf32>, vector<2x8xf32> -> vector<2x8xf32>
    %c0_49 = arith.constant 0 : index
    %c0_50 = arith.constant 0 : index
    %98 = vector.load %arg8[%c0_49, %c0_50] : memref<1x8xf32, #tpu.memory_space<vmem>>, vector<1x8xf32>
    %99 = vector.broadcast %98 : vector<1x8xf32> to vector<2x8xf32>
    %100 = arith.addf %97, %99 : vector<2x8xf32>
    %c0_51 = arith.constant 0 : index
    %c0_52 = arith.constant 0 : index
    %101 = vector.load %arg9[%c0_51, %c0_52] : memref<8x8xf32, #tpu.memory_space<vmem>>, vector<8x8xf32>
    %cst_53 = arith.constant dense<0.000000e+00> : vector<2x8xf32>
    %102 = tpu.matmul %95, %101, %cst_53 {dimension_numbers = #tpu.dot_dimension_numbers<[1], [0], [0], [1], [0, 0, 1, 1], [], []>} : vector<2x8xf32>, vector<8x8xf32>, vector<2x8xf32> -> vector<2x8xf32>
    %c0_54 = arith.constant 0 : index
    %c0_55 = arith.constant 0 : index
    %103 = vector.load %arg10[%c0_54, %c0_55] : memref<1x8xf32, #tpu.memory_space<vmem>>, vector<1x8xf32>
    %104 = vector.broadcast %103 : vector<1x8xf32> to vector<2x8xf32>
    %105 = arith.addf %102, %104 : vector<2x8xf32>
    %106 = vector.shape_cast %100 : vector<2x8xf32> to vector<2x1x8xf32>
    %107 = vector.broadcast %106 : vector<2x1x8xf32> to vector<2x16x8xf32>
    %108 = arith.mulf %107, %76 : vector<2x16x8xf32>
    %109 = vector.shape_cast %105 : vector<2x8xf32> to vector<2x1x8xf32>
    %110 = vector.broadcast %109 : vector<2x1x8xf32> to vector<2x16x8xf32>
    %111 = arith.addf %108, %110 : vector<2x16x8xf32>
    %c0_56 = arith.constant 0 : index
    %c0_57 = arith.constant 0 : index
    %112 = vector.load %arg12[%c0_56, %c0_57] : memref<1x8xf32, #tpu.memory_space<vmem>>, vector<1x8xf32>
    %cst_58 = arith.constant 0.000000e+00 : f32
    %113 = vector.broadcast %cst_58 : f32 to vector<2x1x8xf32>
    %114 = tpu.concatenate %113, %111, %113 in 1 : vector<2x1x8xf32>, vector<2x16x8xf32>, vector<2x1x8xf32> -> vector<2x18x8xf32>
    %cst_59 = arith.constant 0.000000e+00 : f32
    %115 = vector.broadcast %cst_59 : f32 to vector<32x8xf32>
    %116 = vector.extract_strided_slice %114 {offsets = [0, 0, 0], sizes = [2, 16, 8], strides = [1, 1, 1]} : vector<2x18x8xf32> to vector<2x16x8xf32>
    %117 = vector.shape_cast %116 : vector<2x16x8xf32> to vector<32x8xf32>
    %c0_60 = arith.constant 0 : index
    %c0_61 = arith.constant 0 : index
    %c0_62 = arith.constant 0 : index
    %118 = vector.load %arg11[%c0_60, %c0_61, %c0_62] : memref<3x8x8xf32, #tpu.memory_space<vmem>>, vector<1x8x8xf32>
    %119 = vector.shape_cast %118 : vector<1x8x8xf32> to vector<8x8xf32>
    %cst_63 = arith.constant dense<0.000000e+00> : vector<32x8xf32>
    %120 = tpu.matmul %117, %119, %cst_63 {dimension_numbers = #tpu.dot_dimension_numbers<[1], [0], [0], [1], [0, 0, 1, 1], [], []>} : vector<32x8xf32>, vector<8x8xf32>, vector<32x8xf32> -> vector<32x8xf32>
    %121 = arith.addf %115, %120 : vector<32x8xf32>
    %122 = vector.extract_strided_slice %114 {offsets = [0, 1, 0], sizes = [2, 16, 8], strides = [1, 1, 1]} : vector<2x18x8xf32> to vector<2x16x8xf32>
    %123 = vector.shape_cast %122 : vector<2x16x8xf32> to vector<32x8xf32>
    %c1_64 = arith.constant 1 : index
    %c0_65 = arith.constant 0 : index
    %c0_66 = arith.constant 0 : index
    %124 = vector.load %arg11[%c1_64, %c0_65, %c0_66] : memref<3x8x8xf32, #tpu.memory_space<vmem>>, vector<1x8x8xf32>
    %125 = vector.shape_cast %124 : vector<1x8x8xf32> to vector<8x8xf32>
    %cst_67 = arith.constant dense<0.000000e+00> : vector<32x8xf32>
    %126 = tpu.matmul %123, %125, %cst_67 {dimension_numbers = #tpu.dot_dimension_numbers<[1], [0], [0], [1], [0, 0, 1, 1], [], []>} : vector<32x8xf32>, vector<8x8xf32>, vector<32x8xf32> -> vector<32x8xf32>
    %127 = arith.addf %121, %126 : vector<32x8xf32>
    %128 = vector.extract_strided_slice %114 {offsets = [0, 2, 0], sizes = [2, 16, 8], strides = [1, 1, 1]} : vector<2x18x8xf32> to vector<2x16x8xf32>
    %129 = vector.shape_cast %128 : vector<2x16x8xf32> to vector<32x8xf32>
    %c2_68 = arith.constant 2 : index
    %c0_69 = arith.constant 0 : index
    %c0_70 = arith.constant 0 : index
    %130 = vector.load %arg11[%c2_68, %c0_69, %c0_70] : memref<3x8x8xf32, #tpu.memory_space<vmem>>, vector<1x8x8xf32>
    %131 = vector.shape_cast %130 : vector<1x8x8xf32> to vector<8x8xf32>
    %cst_71 = arith.constant dense<0.000000e+00> : vector<32x8xf32>
    %132 = tpu.matmul %129, %131, %cst_71 {dimension_numbers = #tpu.dot_dimension_numbers<[1], [0], [0], [1], [0, 0, 1, 1], [], []>} : vector<32x8xf32>, vector<8x8xf32>, vector<32x8xf32> -> vector<32x8xf32>
    %133 = arith.addf %127, %132 : vector<32x8xf32>
    %134 = vector.shape_cast %133 : vector<32x8xf32> to vector<2x16x8xf32>
    %135 = vector.shape_cast %112 : vector<1x8xf32> to vector<1x1x8xf32>
    %136 = vector.broadcast %135 : vector<1x1x8xf32> to vector<2x16x8xf32>
    %137 = arith.addf %134, %136 : vector<2x16x8xf32>
    %c0_72 = arith.constant 0 : index
    %c0_73 = arith.constant 0 : index
    %138 = vector.load %arg13[%c0_72, %c0_73] : memref<1x8xf32, #tpu.memory_space<vmem>>, vector<1x8xf32>
    %c0_74 = arith.constant 0 : index
    %c0_75 = arith.constant 0 : index
    %139 = vector.load %arg14[%c0_74, %c0_75] : memref<1x8xf32, #tpu.memory_space<vmem>>, vector<1x8xf32>
    %cst_76 = arith.constant dense<0.000000e+00> : vector<2x8xf32>
    %140 = vector.multi_reduction <add>, %137, %cst_76 [1] : vector<2x16x8xf32> to vector<2x8xf32>
    %141 = arith.mulf %137, %137 : vector<2x16x8xf32>
    %cst_77 = arith.constant dense<0.000000e+00> : vector<2x8xf32>
    %142 = vector.multi_reduction <add>, %141, %cst_77 [1] : vector<2x16x8xf32> to vector<2x8xf32>
    %cst_78 = arith.constant dense<0.000000e+00> : vector<2x4xf32>
    %143 = tpu.matmul %140, %2, %cst_78 {dimension_numbers = #tpu.dot_dimension_numbers<[1], [0], [0], [1], [0, 0, 1, 1], [], []>} : vector<2x8xf32>, vector<8x4xf32>, vector<2x4xf32> -> vector<2x4xf32>
    %cst_79 = arith.constant 3.125000e-02 : f32
    %144 = vector.broadcast %cst_79 : f32 to vector<2x4xf32>
    %145 = arith.mulf %143, %144 : vector<2x4xf32>
    %cst_80 = arith.constant dense<0.000000e+00> : vector<2x4xf32>
    %146 = tpu.matmul %142, %2, %cst_80 {dimension_numbers = #tpu.dot_dimension_numbers<[1], [0], [0], [1], [0, 0, 1, 1], [], []>} : vector<2x8xf32>, vector<8x4xf32>, vector<2x4xf32> -> vector<2x4xf32>
    %cst_81 = arith.constant 3.125000e-02 : f32
    %147 = vector.broadcast %cst_81 : f32 to vector<2x4xf32>
    %148 = arith.mulf %146, %147 : vector<2x4xf32>
    %149 = arith.mulf %145, %145 : vector<2x4xf32>
    %150 = arith.subf %148, %149 : vector<2x4xf32>
    %cst_82 = arith.constant 0.000000e+00 : f32
    %151 = vector.broadcast %cst_82 : f32 to vector<2x4xf32>
    %152 = arith.maximumf %150, %151 : vector<2x4xf32>
    %cst_83 = arith.constant 9.99999974E-6 : f32
    %153 = vector.broadcast %cst_83 : f32 to vector<2x4xf32>
    %154 = arith.addf %152, %153 : vector<2x4xf32>
    %155 = math.rsqrt %154 : vector<2x4xf32>
    %cst_84 = arith.constant dense<0.000000e+00> : vector<2x8xf32>
    %156 = tpu.matmul %145, %1, %cst_84 {dimension_numbers = #tpu.dot_dimension_numbers<[1], [0], [0], [1], [0, 0, 1, 1], [], []>} : vector<2x4xf32>, vector<4x8xf32>, vector<2x8xf32> -> vector<2x8xf32>
    %cst_85 = arith.constant dense<0.000000e+00> : vector<2x8xf32>
    %157 = tpu.matmul %155, %1, %cst_85 {dimension_numbers = #tpu.dot_dimension_numbers<[1], [0], [0], [1], [0, 0, 1, 1], [], []>} : vector<2x4xf32>, vector<4x8xf32>, vector<2x8xf32> -> vector<2x8xf32>
    %158 = vector.broadcast %138 : vector<1x8xf32> to vector<2x8xf32>
    %159 = arith.mulf %157, %158 : vector<2x8xf32>
    %160 = vector.shape_cast %156 : vector<2x8xf32> to vector<2x1x8xf32>
    %161 = vector.broadcast %160 : vector<2x1x8xf32> to vector<2x16x8xf32>
    %162 = arith.subf %137, %161 : vector<2x16x8xf32>
    %163 = vector.shape_cast %159 : vector<2x8xf32> to vector<2x1x8xf32>
    %164 = vector.broadcast %163 : vector<2x1x8xf32> to vector<2x16x8xf32>
    %165 = arith.mulf %162, %164 : vector<2x16x8xf32>
    %166 = vector.shape_cast %139 : vector<1x8xf32> to vector<1x1x8xf32>
    %167 = vector.broadcast %166 : vector<1x1x8xf32> to vector<2x16x8xf32>
    %168 = arith.addf %165, %167 : vector<2x16x8xf32>
    %cst_86 = arith.constant 3.000000e+01 : f32
    %169 = vector.broadcast %cst_86 : f32 to vector<2x16x8xf32>
    %170 = arith.minimumf %168, %169 : vector<2x16x8xf32>
    %171 = math.exp %170 : vector<2x16x8xf32>
    %cst_87 = arith.constant 1.000000e+00 : f32
    %172 = vector.broadcast %cst_87 : f32 to vector<2x16x8xf32>
    %173 = arith.addf %172, %171 : vector<2x16x8xf32>
    %174 = arith.mulf %173, %173 : vector<2x16x8xf32>
    %cst_88 = arith.constant 1.000000e+00 : f32
    %175 = vector.broadcast %cst_88 : f32 to vector<2x16x8xf32>
    %176 = arith.addf %174, %175 : vector<2x16x8xf32>
    %177 = tpu.reciprocal %176 {approx = true} : vector<2x16x8xf32> -> vector<2x16x8xf32>
    %178 = arith.mulf %176, %177 : vector<2x16x8xf32>
    %cst_89 = arith.constant 2.000000e+00 : f32
    %179 = vector.broadcast %cst_89 : f32 to vector<2x16x8xf32>
    %180 = arith.subf %179, %178 : vector<2x16x8xf32>
    %181 = arith.mulf %177, %180 : vector<2x16x8xf32>
    %cst_90 = arith.constant 1.000000e+00 : f32
    %182 = vector.broadcast %cst_90 : f32 to vector<2x16x8xf32>
    %183 = arith.subf %174, %182 : vector<2x16x8xf32>
    %184 = arith.mulf %168, %183 : vector<2x16x8xf32>
    %185 = arith.mulf %184, %181 : vector<2x16x8xf32>
    %186 = vector.shape_cast %0 : vector<2x16x4xf32> to vector<32x4xf32>
    %c0_91 = arith.constant 0 : index
    %c0_92 = arith.constant 0 : index
    %187 = vector.load %arg15[%c0_91, %c0_92] : memref<4x8xf32, #tpu.memory_space<vmem>>, vector<4x8xf32>
    %cst_93 = arith.constant dense<0.000000e+00> : vector<32x8xf32>
    %188 = tpu.matmul %186, %187, %cst_93 {dimension_numbers = #tpu.dot_dimension_numbers<[1], [0], [0], [1], [0, 0, 1, 1], [], []>} : vector<32x4xf32>, vector<4x8xf32>, vector<32x8xf32> -> vector<32x8xf32>
    %189 = vector.shape_cast %188 : vector<32x8xf32> to vector<2x16x8xf32>
    %c0_94 = arith.constant 0 : index
    %c0_95 = arith.constant 0 : index
    %190 = vector.load %arg16[%c0_94, %c0_95] : memref<1x8xf32, #tpu.memory_space<vmem>>, vector<1x8xf32>
    %191 = vector.shape_cast %190 : vector<1x8xf32> to vector<1x1x8xf32>
    %192 = vector.broadcast %191 : vector<1x1x8xf32> to vector<2x16x8xf32>
    %193 = arith.addf %189, %192 : vector<2x16x8xf32>
    %194 = arith.addf %185, %193 : vector<2x16x8xf32>
    %c0_96 = arith.constant 0 : index
    %c0_97 = arith.constant 0 : index
    %c0_98 = arith.constant 0 : index
    %195 = vector.load %arg19[%c0_96, %c0_97, %c0_98] : memref<2x16x8xf32, #tpu.memory_space<vmem>>, vector<2x16x8xf32>
    tpu.vector_store %arg19[%c0_96, %c0_97, %c0_98], %194 {strides = array<i32>} : memref<2x16x8xf32, #tpu.memory_space<vmem>>, vector<2x16x8xf32>,
    return
  }
  func.func @transform_0(%arg0: i32) -> (i32, i32, i32) {
    %c0_i32 = arith.constant 0 : i32
    %c0_i32_0 = arith.constant 0 : i32
    %c0_i32_1 = arith.constant 0 : i32
    return %arg0, %c0_i32, %c0_i32_0 : i32, i32, i32
  }
  func.func @transform_1(%arg0: i32) -> (i32, i32, i32) {
    %c0_i32 = arith.constant 0 : i32
    %c0_i32_0 = arith.constant 0 : i32
    %c0_i32_1 = arith.constant 0 : i32
    return %arg0, %c0_i32, %c0_i32_0 : i32, i32, i32
  }
  func.func @transform_2(%arg0: i32) -> (i32, i32, i32) {
    %c0_i32 = arith.constant 0 : i32
    %c0_i32_0 = arith.constant 0 : i32
    %c0_i32_1 = arith.constant 0 : i32
    %c0_i32_2 = arith.constant 0 : i32
    return %c0_i32, %c0_i32_0, %c0_i32_1 : i32, i32, i32
  }
  func.func @transform_3(%arg0: i32) -> (i32, i32) {
    %c0_i32 = arith.constant 0 : i32
    %c0_i32_0 = arith.constant 0 : i32
    %c0_i32_1 = arith.constant 0 : i32
    return %c0_i32, %c0_i32_0 : i32, i32
  }
  func.func @transform_4(%arg0: i32) -> (i32, i32) {
    %c0_i32 = arith.constant 0 : i32
    %c0_i32_0 = arith.constant 0 : i32
    %c0_i32_1 = arith.constant 0 : i32
    return %c0_i32, %c0_i32_0 : i32, i32
  }
  func.func @transform_5(%arg0: i32) -> (i32, i32) {
    %c0_i32 = arith.constant 0 : i32
    %c0_i32_0 = arith.constant 0 : i32
    %c0_i32_1 = arith.constant 0 : i32
    return %c0_i32, %c0_i32_0 : i32, i32
  }
  func.func @transform_6(%arg0: i32) -> (i32, i32) {
    %c0_i32 = arith.constant 0 : i32
    %c0_i32_0 = arith.constant 0 : i32
    %c0_i32_1 = arith.constant 0 : i32
    return %c0_i32, %c0_i32_0 : i32, i32
  }
  func.func @transform_7(%arg0: i32) -> (i32, i32) {
    %c0_i32 = arith.constant 0 : i32
    %c0_i32_0 = arith.constant 0 : i32
    %c0_i32_1 = arith.constant 0 : i32
    return %c0_i32, %c0_i32_0 : i32, i32
  }
  func.func @transform_8(%arg0: i32) -> (i32, i32) {
    %c0_i32 = arith.constant 0 : i32
    %c0_i32_0 = arith.constant 0 : i32
    %c0_i32_1 = arith.constant 0 : i32
    return %c0_i32, %c0_i32_0 : i32, i32
  }
  func.func @transform_9(%arg0: i32) -> (i32, i32) {
    %c0_i32 = arith.constant 0 : i32
    %c0_i32_0 = arith.constant 0 : i32
    %c0_i32_1 = arith.constant 0 : i32
    return %c0_i32, %c0_i32_0 : i32, i32
  }
  func.func @transform_10(%arg0: i32) -> (i32, i32, i32) {
    %c0_i32 = arith.constant 0 : i32
    %c0_i32_0 = arith.constant 0 : i32
    %c0_i32_1 = arith.constant 0 : i32
    %c0_i32_2 = arith.constant 0 : i32
    return %c0_i32, %c0_i32_0, %c0_i32_1 : i32, i32, i32
  }
  func.func @transform_11(%arg0: i32) -> (i32, i32) {
    %c0_i32 = arith.constant 0 : i32
    %c0_i32_0 = arith.constant 0 : i32
    %c0_i32_1 = arith.constant 0 : i32
    return %c0_i32, %c0_i32_0 : i32, i32
  }
  func.func @transform_12(%arg0: i32) -> (i32, i32) {
    %c0_i32 = arith.constant 0 : i32
    %c0_i32_0 = arith.constant 0 : i32
    %c0_i32_1 = arith.constant 0 : i32
    return %c0_i32, %c0_i32_0 : i32, i32
  }
  func.func @transform_13(%arg0: i32) -> (i32, i32) {
    %c0_i32 = arith.constant 0 : i32
    %c0_i32_0 = arith.constant 0 : i32
    %c0_i32_1 = arith.constant 0 : i32
    return %c0_i32, %c0_i32_0 : i32, i32
  }
  func.func @transform_14(%arg0: i32) -> (i32, i32) {
    %c0_i32 = arith.constant 0 : i32
    %c0_i32_0 = arith.constant 0 : i32
    %c0_i32_1 = arith.constant 0 : i32
    return %c0_i32, %c0_i32_0 : i32, i32
  }
  func.func @transform_15(%arg0: i32) -> (i32, i32) {
    %c0_i32 = arith.constant 0 : i32
    %c0_i32_0 = arith.constant 0 : i32
    %c0_i32_1 = arith.constant 0 : i32
    return %c0_i32, %c0_i32_0 : i32, i32
  }
  func.func @transform_16(%arg0: i32) -> (i32, i32) {
    %c0_i32 = arith.constant 0 : i32
    %c0_i32_0 = arith.constant 0 : i32
    %c0_i32_1 = arith.constant 0 : i32
    return %c0_i32, %c0_i32_0 : i32, i32
  }
  func.func @transform_17(%arg0: i32) -> (i32, i32) {
    %c0_i32 = arith.constant 0 : i32
    %c0_i32_0 = arith.constant 0 : i32
    %c0_i32_1 = arith.constant 0 : i32
    return %c0_i32, %c0_i32_0 : i32, i32
  }
  func.func @transform_18(%arg0: i32) -> (i32, i32, i32) {
    %c0_i32 = arith.constant 0 : i32
    %c0_i32_0 = arith.constant 0 : i32
    %c0_i32_1 = arith.constant 0 : i32
    return %arg0, %c0_i32, %c0_i32_0 : i32, i32, i32
  }
}

</mosaic_0001>

<bundles_post_ra>
// kernel: tpu_custom_call.1
= control target key start
LH: loop header
LB: loop body
LE: loop exit
PB: predicated region body
PF: predicated region fallthrough
CT: control target
= control target key end

     0   :  { %s3059_s0 = inlined_call_operand.vmem [shape: f32[2,16,4], index: 0, kind: input, shape index: {}]   ;;  %s3060_s1 = inlined_call_operand.hbm [shape: f32[2,1,8], index: 1, kind: input, shape index: {}]   ;;  %s3061_s2 = inlined_call_operand.vmem [shape: f32[3,4,8], index: 2, kind: input, shape index: {}]   ;;  %s3062_s3 = inlined_call_operand.hbm [shape: f32[1,8], index: 3, kind: input, shape index: {}]   ;;  %s3063_s4 = inlined_call_operand.hbm [shape: f32[1,8], index: 4, kind: input, shape index: {}]   ;;  %s3064_s5 = inlined_call_operand.hbm [shape: f32[1,8], index: 5, kind: input, shape index: {}]   ;;  %s3065_s6 = inlined_call_operand.vmem [shape: f32[8,8], index: 6, kind: input, shape index: {}]   ;;  %s3066_s7 = inlined_call_operand.hbm [shape: f32[1,8], index: 7, kind: input, shape index: {}]   ;;  %s3067_s8 = inlined_call_operand.vmem [shape: f32[8,8], index: 8, kind: input, shape index: {}]   ;;  %s3068_s9 = inlined_call_operand.vmem [shape: f32[1,8], index: 9, kind: input, shape index: {}]   ;;  %s3069_s10 = inlined_call_operand.vmem [shape: f32[3,8,8], index: 10, kind: input, shape index: {}]   ;;  %s3070_s11 = inlined_call_operand.vmem [shape: f32[1,8], index: 11, kind: input, shape index: {}]   ;;  %s3071_s12 = inlined_call_operand.vmem [shape: f32[1,8], index: 12, kind: input, shape index: {}]   ;;  %s3072_s13 = inlined_call_operand.vmem [shape: f32[1,8], index: 13, kind: input, shape index: {}]   ;;  %s3073_s14 = inlined_call_operand.vmem [shape: f32[4,8], index: 14, kind: input, shape index: {}]   ;;  %s3074_s15 = inlined_call_operand.vmem [shape: f32[1,8], index: 15, kind: input, shape index: {}]   ;;  %s3075_s16 = inlined_call_operand.vmem [shape: f32[4,8], index: 16, kind: input, shape index: {}]   ;;  %s3076_s17 = inlined_call_operand.vmem [shape: f32[8,4], index: 17, kind: input, shape index: {}]   ;;  %s3077_s18 = inlined_call_operand.vmem [shape: f32[2,16,8], index: 18, kind: output, shape index: {}]  }
   0x1   :  { %3080 = sst [smem:[#allocation13_spill]] %s3059_s0 }
   0x2   :  { %3081 = sst [smem:[#allocation14_spill]] %s3060_s1 }
   0x3   :  { %3082 = sst [smem:[#allocation15_spill]] %s3061_s2 }
   0x4   :  { %23 = vsyncpa [#allocation3], 0 }
   0x5   :  { %24 = vsyncpa [#allocation5], 0 }
   0x6   :  { %25 = vsyncpa [#allocation8], 0  ;;  %s2594_s27 = smov [#allocation4]   ;;  %s2595_s29 = smov [#allocation7]  }
   0x7   :  { %s48_s28 = sshll.u32 %s2594_s27, 4  ;;  %s68_s30 = sshll.u32 %s2595_s29, 4  ;;  %s49_s28 = int_to_ptr.vmem [resolvable:$true] %s48_s28  ;;  %s69_s30 = int_to_ptr.vmem [resolvable:$true] %s68_s30 }
   0x8   :  { %s2496_s0 = scalar_lea.vmem %s49_s28, 16  ;;  %s2500_s19 = scalar_lea.vmem %s49_s28, 32 }
   0x9   :  { %p2497_p0 = scmp.ne.s32.totalorder %s49_s28, %s2496_s0  ;;  %p2501_p1 = scmp.lt.s32.totalorder %s49_s28, %s49_s28 }
   0xa   :  { %p2502_p2 = scmp.lt.s32.totalorder %s2500_s19, %s2496_s0 }
   0xc   :  { %p2503_p3 = por %p2502_p2, %p2501_p1 }
   0xe   :  { %p2504_p4 = pnand %p2503_p3, %p2497_p0 }
  0x10   :  { %2507 = shalt.err (!%p2504_p4)
}
  0x11   :  { %51 = dma.hbm_to_vmem [thread:$0]  %s3062_s3, 16, %s49_s28, [#allocation5]  }
  0x12   :  { %s2516_s21 = scalar_lea.vmem %s69_s30, 16  ;;  %s2520_s22 = scalar_lea.vmem %s69_s30, 32 }
  0x13   :  { %p2517_p5 = scmp.ne.s32.totalorder %s69_s30, %s2516_s21  ;;  %p2521_p6 = scmp.lt.s32.totalorder %s69_s30, %s69_s30 }
  0x14   :  { %p2522_p7 = scmp.lt.s32.totalorder %s2520_s22, %s2516_s21 }
  0x16   :  { %p2523_p8 = por %p2522_p7, %p2521_p6 }
  0x18   :  { %p2524_p9 = pnand %p2523_p8, %p2517_p5 }
  0x1a   :  { %2527 = shalt.err (!%p2524_p9)
}
  0x1b   :  { %71 = dma.hbm_to_vmem [thread:$0]  %s3064_s5, 16, %s69_s30, [#allocation8]  }
  0x1c   :  { %s2596_s24 = smov [#allocation2]  }
  0x1d   :  { %s33_s25 = sshll.u32 %s2596_s24, 4  ;;  %s34_s25 = int_to_ptr.vmem [resolvable:$true] %s33_s25 }
  0x1e   :  { %s2536_s26 = scalar_lea.vmem %s34_s25, 32  ;;  %p2541_p11 = scmp.lt.s32.totalorder %s34_s25, %s34_s25 }
  0x1f   :  { %p2537_p10 = scmp.ne.s32.totalorder %s34_s25, %s2536_s26  ;;  %p2542_p12 = scmp.lt.s32.totalorder %s2536_s26, %s2536_s26 }
  0x21   :  { %p2543_p13 = por %p2542_p12, %p2541_p11 }
  0x23   :  { %p2544_p0 = pnand %p2543_p13, %p2537_p10 }
  0x25   :  { %2547 = shalt.err (!%p2544_p0)
}
  0x26   :  { %s2597_s3 = smov 16   ;;  %s2598_s27 = smov 1  }
  0x27   :  { %s3083_s0 = sld [smem:[#allocation14_spill]]  ;;  %s2599_s19 = smov [#allocation6]  }
  0x28   :  { %s58_s1 = sshll.u32 %s2599_s19, 4  ;;  %s2600_s5 = smov [#allocation9]   ;;  %s59_s1 = int_to_ptr.vmem [resolvable:$true] %s58_s1 }
  0x29   :  { %s80_s30 = sshll.u32 %s2600_s5, 4  ;;  %s2556_s20 = scalar_lea.vmem %s59_s1, 16  ;;  %s81_s30 = int_to_ptr.vmem [resolvable:$true] %s80_s30 }
  0x2a   :  { %p2557_p1 = scmp.ne.s32.totalorder %s59_s1, %s2556_s20  ;;  %s2560_s21 = scalar_lea.vmem %s59_s1, 32 }
  0x2b   :  { %p2561_p2 = scmp.lt.s32.totalorder %s59_s1, %s59_s1  ;;  %p2562_p3 = scmp.lt.s32.totalorder %s2560_s21, %s2556_s20 }
  0x2d   :  { %39 = dma.hbm_to_vmem [thread:$0]  %s3083_s0, 32, %s34_s25, [#allocation3], %s2597_s3, %s2597_s3, %s2598_s27  }
  0x2e   :  { %p2563_p4 = por %p2562_p3, %p2561_p2 }
  0x30   :  { %p2564_p5 = pnand %p2563_p4, %p2557_p1 }
  0x32   :  { %2567 = shalt.err (!%p2564_p5)
}
  0x33   :  { %61 = dma.hbm_to_vmem [thread:$0]  %s3063_s4, 16, %s59_s1, [#allocation5]  }
  0x34   :  { %s2576_s23 = scalar_lea.vmem %s81_s30, 16  ;;  %s2580_s24 = scalar_lea.vmem %s81_s30, 32 }
  0x35   :  { %p2577_p6 = scmp.ne.s32.totalorder %s81_s30, %s2576_s23  ;;  %p2581_p7 = scmp.lt.s32.totalorder %s81_s30, %s81_s30 }
  0x36   :  { %p2582_p8 = scmp.lt.s32.totalorder %s2580_s24, %s2576_s23 }
  0x38   :  { %p2583_p9 = por %p2582_p8, %p2581_p7 }
  0x3a   :  { %p2584_p10 = pnand %p2583_p9, %p2577_p6 }
  0x3c   :  { %2587 = shalt.err (!%p2584_p10)
}
  0x3d   :  { %83 = dma.hbm_to_vmem [thread:$0]  %s3066_s7, 16, %s81_s30, [#allocation8]  }
  0x3e   :  { %2588 = dma.done.wait [#allocation3], 32  }
  0x3f   :  { %2589 = vsyncadd [#allocation3], 4294967264 }
  0x40   :  { %2590 = dma.done.wait [#allocation5], 32  }
  0x41   :  { %2591 = vsyncadd [#allocation5], 4294967264 }
  0x42   :  { %2592 = dma.done.wait [#allocation8], 32  }
  0x43   :  { %2593 = vsyncadd [#allocation8], 4294967264  ;;  %vm172_vm0 = vcmask 1043456   ;;  %s3084_s27 = sld [smem:[#allocation15_spill]]  ;;  %vm130_vm1 = vcmask 1040384   ;;  %vm150_vm2 = vcmask 1046528  }
  0x44   :  { %s3085_s0 = sld [smem:[#allocation13_spill]]  ;;  %vm163_vm3 = vcmask 31744   ;;  %vm357_vm4 = vcmask 1045504   ;;  %v2784_v37 = vld [vmem:[%s3076_s17] sm:$0xff]  ;;  %v2601_v38 = vmov 0.0   ;;  %vm2602_vm5 = vmmov 0  }
  0x45   :  { %v2219_v47 = vld [vmem:[#allocation4] ss:$0 sm:$0xff]  ;;  %vm482_vm6 = vcmask 64512   ;;  %vm525_vm7 = vcmask 1041409  }
  0x49   :  { %v2202_v0 = vld [vmem:[%s3084_s27 + $0x4] sm:$0xf]  ;;  %v145_v7 = vld [vmem:[%s3084_s27] sm:$0xf]  ;;  %v2213_v10 = vld [vmem:[%s3084_s27 + $0x8] sm:$0xf] }
  0x4a   :  { %v2720_v1 = vld [vmem:[%s3085_s0] sm:$0xff]  ;;  %v2725_v2 = vld [vmem:[%s3085_s0 + $0x8] sm:$0xff]  ;;  %2432 = vmatprep.subr.msk.mxu1 %vm172_vm0, %v2202_v0  ;;  %2326 = vmatprep.subr.msk.mxu0 %vm172_vm0, %v2202_v0  ;;  %v2734_v5 = vld [vmem:[%s3085_s0 + $0x10] sm:$0xff] }
  0x4b   :  { %v131_v3 = vrot.slane %v2720_v1, 7  ;;  %v132_v4 = vrot.slane %v2725_v2, 7  ;;  %v2739_v6 = vld [vmem:[%s3085_s0 + $0x18] sm:$0xff]  ;;  %2433 = vmatpush3.msk.msra.mxu1 %vm172_vm0, %v2202_v0  ;;  %2327 = vmatpush3.msk.msra.mxu0 %vm172_vm0, %v2202_v0  ;;  %v134_v8 = vrot.slane %v2734_v5, 7 }
  0x4c   :  { %v135_v9 = vrot.slane %v2739_v6, 7  ;;  %2334 = vmatprep.subr.msk.mxu1 %vm172_vm0, %v145_v7  ;;  %2342 = vmatprep.subr.msk.mxu0 %vm172_vm0, %v2213_v10 }
  0x4d   :  { %v133_v11 = vsel %vm130_vm1, %v131_v3, %v132_v4  ;;  %v141_v12 = vsel %vm130_vm1, 0.0, %v131_v3  ;;  %v143_v13 = vsel %vm130_vm1, %v132_v4, 0.0  ;;  %v142_v17 = vsel %vm130_vm1, 0.0, %v134_v8 }
  0x4e   :  { %v151_v14 = vrot.slane %v141_v12, 1  ;;  %v152_v15 = vrot.slane %v133_v11, 1  ;;  %v136_v16 = vsel %vm130_vm1, %v134_v8, %v135_v9  ;;  %v156_v18 = vrot.slane %v142_v17, 1 }
  0x4f   :  { %v157_v19 = vrot.slane %v136_v16, 1  ;;  %v154_v20 = vrot.slane %v143_v13, 1  ;;  %v361_v21 = vrot.slane %v143_v13, 2  ;;  %v144_v23 = vsel %vm130_vm1, %v135_v9, 0.0 }
  0x50   :  { %v153_v22 = vsel %vm150_vm2, %v151_v14, %v152_v15  ;;  %v358_v24 = vrot.slane %v141_v12, 2  ;;  %v359_v25 = vrot.slane %v133_v11, 2  ;;  %v159_v28 = vrot.slane %v144_v23, 1 }
  0x51   :  { %2328 = vmatprep.mubr.msk.f32.mxu0 %vm163_vm3, %v153_v22  ;;  %v158_v26 = vsel %vm150_vm2, %v156_v18, %v157_v19  ;;  %v155_v27 = vsel %vm150_vm2, %v152_v15, %v154_v20  ;;  %v363_v29 = vrot.slane %v142_v17, 2  ;;  %v364_v31 = vrot.slane %v136_v16, 2 }
  0x52   :  { %2331 = vmatprep.mubr.msk.f32.mxu1 %vm163_vm3, %v158_v26  ;;  %2329 = vmatmul.mubr.msk.f32.vlgmr.msra.gmra.mxu0 %vm163_vm3, %v155_v27  ;;  %v360_v30 = vsel %vm357_vm4, %v358_v24, %v359_v25  ;;  %v160_v32 = vsel %vm150_vm2, %v157_v19, %v159_v28  ;;  %v362_v33 = vsel %vm357_vm4, %v359_v25, %v361_v21  ;;  %v366_v34 = vrot.slane %v144_v23, 2 }
  0x53   :  { %2343 = vmatpush3.msk.msra.mxu0 %vm172_vm0, %v2213_v10  ;;  %2344 = vmatprep.mubr.msk.f32.mxu0 %vm163_vm3, %v360_v30  ;;  %v365_v35 = vsel %vm357_vm4, %v363_v29, %v364_v31 }
  0x54   :  { %2332 = vmatmul.mubr.msk.f32.vlgmr.msra.gmra.mxu1 %vm163_vm3, %v160_v32  ;;  %v367_v36 = vsel %vm357_vm4, %v364_v31, %v366_v34  ;;  %2360 = vmatprep.subr.mxu0 %v2601_v38 }
  0x55   :  { %2335 = vmatpush3.msk.msra.mxu1 %vm172_vm0, %v145_v7  ;;  %2336 = vmatprep.mubr.msk.f32.mxu1 %vm163_vm3, %v141_v12 }
  0x56   :  { %2345 = vmatmul.mubr.msk.f32.vlgmr.msra.gmra.mxu0 %vm163_vm3, %v362_v33  ;;  %2350 = vmatprep.subr.mxu1 %v2601_v38 }
  0x57   :  { %2347 = vmatprep.mubr.msk.f32.mxu0 %vm163_vm3, %v365_v35 }
  0x58   :  { %2337 = vmatmul.mubr.msk.f32.vlgmr.msra.gmra.mxu1 %vm163_vm3, %v133_v11 }
  0x59   :  { %2339 = vmatprep.mubr.msk.f32.mxu1 %vm163_vm3, %v142_v17  ;;  %2351 = vmatpush3.msra.mxu1 %v2784_v37 }
  0x5a   :  { %2348 = vmatmul.mubr.msk.f32.gmra.mxu0 %vm163_vm3, %v367_v36  ;;  %2355 = vmatprep.subr.mxu1 %v2601_v38 }
  0x5b   :  { %2362 = vmatprep.mubr.msk.f32.mxu0 %vm2602_vm5, %v2601_v38 }
  0x5c   :  { %2340 = vmatmul.mubr.msk.f32.gmra.mxu1 %vm163_vm3, %v136_v16 }
  0x5d   :  { %2352 = vmatprep.mubr.msk.f32.mxu1 %vm2602_vm5, %v2601_v38 }
 0x112   :  { %v2330_v39 = vpop.f32.mrf.mxu0 }
 0x114   :  { %v2333_v40 = vpop.f32.mrf.mxu1  ;;  %v242_v41 = vpop.f32.mrf.mxu0 }
 0x116   :  { %v252_v42 = vpop.f32.mrf.mxu1  ;;  %v2346_v43 = vpop.f32.mrf.mxu0 }
 0x118   :  { %v2338_v44 = vpop.f32.mrf.mxu1  ;;  %v447_v46 = vpop.f32.mrf.mxu0 }
 0x119   :  { %v344_v45 = vadd.f32 %v2338_v44, %v2330_v39 }
 0x11a   :  { %v338_v48 = vpop.f32.mrf.mxu1  ;;  %v2349_v55 = vpop.f32.mrf.mxu0 }
 0x11b   :  { %v467_v49 = vadd.f32 %v2346_v43, %v344_v45  ;;  %v339_v50 = vadd.f32 %v338_v48, %v242_v41  ;;  %v2835_v48 = vld [vmem:[%s3075_s16] sm:$0xf] }
 0x11c   :  { %v2341_v51 = vpop.f32.mrf.mxu1  ;;  %v457_v3 = vpop.f32.mrf.mxu0  ;;  %2361 = vmatpush3.msk.msra.mxu0 %vm172_vm0, %v2835_v48 }
 0x11d   :  { %v2794_v52 = vadd.f32 %v2219_v47, %v467_v49  ;;  %v466_v53 = vadd.f32 %v447_v46, %v339_v50  ;;  %v354_v54 = vadd.f32 %v2341_v51, %v2333_v40  ;;  %2370 = vmatprep.subr.mxu0 %v2601_v38  ;;  %v973_v49 = vld [vmem:[#allocation2] sm:$0x1]  ;;  %v974_v50 = vld [vmem:[#allocation2 + $0x1] sm:$0x1] }
 0x11e   :  { %v348_v56 = vpop.f32.mrf.mxu1  ;;  %v975_v51 = vmin.f32 %v973_v49, 30.0 }
 0x11f   :  { %v502_v57 = vmul.f32 %v2794_v52, %v2794_v52  ;;  %v2798_v58 = vadd.f32 %v2219_v47, %v466_v53  ;;  %v469_v59 = vadd.f32 %v2349_v55, %v354_v54  ;;  %v349_v60 = vadd.f32 %v348_v56, %v252_v42 }
 0x120   :  { %v484_v61 = vsel %vm482_vm6, %v2794_v52, 0.0  ;;  %v976_v53 = vmin.f32 %v974_v50, 30.0  ;;  %v977_v54 = vmul.f32 1.442695, %v975_v51 }
 0x121   :  { %v483_v62 = vsel %vm482_vm6, %v2798_v58, 0.0  ;;  %v501_v63 = vmul.f32 %v2798_v58, %v2798_v58  ;;  %v2806_v0 = vadd.f32 %v2219_v47, %v469_v59  ;;  %v468_v7 = vadd.f32 %v457_v3, %v349_v60 }
 0x122   :  { %v485_v4 = vadd.f32 %v484_v61, %v483_v62  ;;  %v506_v8 = vsel %vm482_vm6, %v502_v57, 0.0  ;;  %v979_v55 = vmul.f32 1.442695, %v976_v53  ;;  %2444 = vpow2.f32 %v977_v54 }
 0x123   :  { %v505_v9 = vsel %vm482_vm6, %v501_v63, 0.0  ;;  %v504_v12 = vmul.f32 %v2806_v0, %v2806_v0  ;;  %v2812_v13 = vadd.f32 %v2219_v47, %v468_v7  ;;  %v493_v14 = vsel %vm482_vm6, %v2806_v0, 0.0 }
 0x124   :  { %v486_v10 = vrot.slane %v485_v4, 4  ;;  %v507_v11 = vadd.f32 %v506_v8, %v505_v9  ;;  %2446 = vpow2.f32 %v979_v55 }
 0x125   :  { %v492_v17 = vsel %vm482_vm6, %v2812_v13, 0.0  ;;  %v503_v18 = vmul.f32 %v2812_v13, %v2812_v13  ;;  %v515_v22 = vsel %vm482_vm6, %v504_v12, 0.0 }
 0x126   :  { %v487_v15 = vadd.f32 %v486_v10, %v485_v4  ;;  %v508_v16 = vrot.slane %v507_v11, 4  ;;  %v494_v19 = vadd.f32 %v493_v14, %v492_v17  ;;  %v841_v17 = vlaneseq }
 0x127   :  { %v514_v23 = vsel %vm482_vm6, %v503_v18, 0.0 }
 0x128   :  { %v488_v20 = vrot.slane %v487_v15, 2  ;;  %v509_v21 = vadd.f32 %v508_v16, %v507_v11  ;;  %v495_v24 = vrot.slane %v494_v19, 4  ;;  %v516_v25 = vadd.f32 %v515_v22, %v514_v23 }
 0x129   :  { %v842_v23 = vshrl.u32 %v841_v17, 7 }
 0x12a   :  { %v489_v26 = vadd.f32 %v488_v20, %v487_v15  ;;  %v510_v27 = vrot.slane %v509_v21, 2  ;;  %v496_v28 = vadd.f32 %v495_v24, %v494_v19  ;;  %v517_v29 = vrot.slane %v516_v25, 4 }
 0x12b   :  { %v2603_v15 = vmov 1966171168  }
 0x12c   :  { %v497_v30 = vrot.slane %v496_v28, 2  ;;  %v518_v31 = vadd.f32 %v517_v29, %v516_v25  ;;  %v490_v32 = vrot.slane %v489_v26, 1  ;;  %v511_v35 = vadd.f32 %v510_v27, %v509_v21 }
 0x12d   :  { %v839_v16 = vunpack.c.l.s4 %v2603_v15 }
 0x12e   :  { %v498_v33 = vadd.f32 %v497_v30, %v496_v28  ;;  %v519_v34 = vrot.slane %v518_v31, 2  ;;  %v491_v40 = vadd.f32 %v490_v32, %v489_v26  ;;  %v512_v42 = vrot.slane %v511_v35, 1 }
 0x12f   :  { %v2445_v56 = vpop.eup %2444  ;;  %v840_v22 = vunpack.c.0.s8 %v839_v16 }
 0x130   :  { %v499_v36 = vrot.slane %v498_v33, 1  ;;  %v520_v39 = vadd.f32 %v519_v34, %v518_v31  ;;  %v513_v46 = vadd.f32 %v512_v42, %v511_v35  ;;  %v981_v59 = vadd.f32 1.0, %v2445_v56  ;;  %v1001_v31 = vld [vmem:[%s3065_s6] sm:$0xff] }
 0x131   :  { %v2447_v57 = vpop.eup %2446  ;;  %v2843_v26 = vsub.s32 %v840_v22, %v842_v23  ;;  %v2226_v56 = vld [vmem:[#allocation6] ss:$0 sm:$0xff] }
 0x132   :  { %v500_v41 = vadd.f32 %v499_v36, %v498_v33  ;;  %v521_v43 = vrot.slane %v520_v39, 1  ;;  %v982_v60 = vadd.f32 1.0, %v2447_v57  ;;  %v983_v61 = vmul.f32 %v981_v59, %v981_v59 }
 0x133   :  { %v2878_v59 = vsub.s32 0, %v842_v23 }
 0x134   :  { %v526_v44 = vsel %vm525_vm7, %v500_v41, %v491_v40  ;;  %v522_v45 = vadd.f32 %v521_v43, %v520_v39  ;;  %v984_v62 = vmul.f32 %v982_v60, %v982_v60  ;;  %v985_v63 = vadd.f32 1.0, %v983_v61  ;;  %v1098_v43 = vld [vmem:[%s3067_s8] sm:$0xff] }
 0x135   :  { %2353 = vmatmul.mubr.msk.f32.vlgmr.msra.gmra.mxu1 %vm482_vm6, %v526_v44  ;;  %v2232_v12 = vadd.f32 -1.0, %v983_v61 }
 0x136   :  { %2356 = vmatpush3.msra.mxu1 %v2784_v37  ;;  %2357 = vmatprep.mubr.msk.f32.mxu1 %vm2602_vm5, %v2601_v38  ;;  %v602_v47 = vsel %vm525_vm7, %v522_v45, %v513_v46  ;;  %v986_v3 = vadd.f32 1.0, %v984_v62  ;;  %2448 = vrcp.f32 %v985_v63  ;;  %v2233_v14 = vadd.f32 -1.0, %v984_v62  ;;  %v1269_v45 = vld [vmem:[%s3069_s10] sm:$0xff]  ;;  %v2238_v46 = vld [vmem:[%s3069_s10 + $0x8] sm:$0xff] }
 0x137   :  { %2365 = vmatprep.subr.mxu1 %v2601_v38  ;;  %v997_v20 = vmul.f32 %v2232_v12, %v973_v49 }
 0x138   :  { %2450 = vrcp.f32 %v986_v3  ;;  %v998_v21 = vmul.f32 %v2233_v14, %v974_v50 }
 0x139   :  { %2358 = vmatmul.mubr.msk.f32.vlgmr.msra.gmra.mxu1 %vm482_vm6, %v602_v47  ;;  %v2871_v47 = vld [vmem:[%s3069_s10 + $0x10] sm:$0xff] }
 0x13a   :  { %2367 = vmatprep.mubr.msk.f32.mxu1 %vm2602_vm5, %v2601_v38  ;;  %2366 = vmatpush3.msk.msra.mxu1 %vm172_vm0, %v2835_v48 }
 0x13b   :  { %2375 = vmatprep.subr.mxu1 %v2601_v38 }
 0x143   :  { %v2449_v4 = vpop.eup %2448 }
 0x144   :  { %v989_v8 = vmul.f32 %v2449_v4, %v985_v63 }
 0x145   :  { %v2451_v7 = vpop.eup %2450 }
 0x146   :  { %v990_v9 = vmul.f32 %v2451_v7, %v986_v3  ;;  %v991_v10 = vsub.f32 2.0, %v989_v8 }
 0x148   :  { %v992_v11 = vsub.f32 2.0, %v990_v9  ;;  %v993_v18 = vmul.f32 %v2449_v4, %v991_v10 }
 0x14a   :  { %v994_v19 = vmul.f32 %v2451_v7, %v992_v11  ;;  %v999_v24 = vmul.f32 %v997_v20, %v993_v18  ;;  %v2227_v18 = vld [vmem:[#allocation7] ss:$0 sm:$0xff] }
 0x14c   :  { %v1000_v25 = vmul.f32 %v998_v21, %v994_v19 }
 0x14e   :  { %v1011_v27 = vcombine.low %v999_v24, %v1000_v25 }
 0x150   :  { %v1018_v28 = vrot.slane %v1011_v27, %v2843_v26 }
 0x152   :  { %v1025_v33 = vrot.slane %v1018_v28, %v2843_v26 }
 0x1f5   :  { %v595_v29 = vpop.f32.mrf.mxu1 }
 0x1f6   :  { %v599_v30 = vmul.f32 0.03125, %v595_v29 }
 0x1f7   :  { %v2354_v32 = vpop.f32.mrf.mxu1 }
 0x1f8   :  { %2363 = vmatmul.mubr.msk.f32.vlgmr.msra.gmra.mxu0 %vm163_vm3, %v599_v30  ;;  %v676_v35 = vmul.f32 %v599_v30, %v599_v30 }
 0x1f9   :  { %v671_v34 = vpop.f32.mrf.mxu1  ;;  %2371 = vmatpush3.msra.mxu0 %v1001_v31  ;;  %2372 = vmatprep.mubr.msk.f32.mxu0 %vm2602_vm5, %v2601_v38 }
 0x1fa   :  { %v675_v36 = vmul.f32 0.03125, %v671_v34  ;;  %2380 = vmatprep.subr.mxu0 %v2238_v46 }
 0x1fb   :  { %v2359_v39 = vpop.f32.mrf.mxu1 }
 0x1fc   :  { %v677_v40 = vsub.f32 %v675_v36, %v676_v35  ;;  %2373 = vmatmul.mubr.msk.f32.vlgmr.msra.gmra.mxu0 %vm482_vm6, %v1025_v33 }
 0x1fd   :  { %2381 = vmatpush3.msra.mxu0 %v2238_v46 }
 0x1fe   :  { %v678_v41 = vmax.f32 %v677_v40, 0.0  ;;  %2396 = vmatprep.subr.mxu0 %v2871_v47 }
 0x200   :  { %v679_v42 = vadd.f32 1e-05, %v678_v41 }
 0x202   :  { %2452 = vrsqrt.f32 %v679_v42 }
 0x20f   :  { %v2453_v44 = vpop.eup %2452 }
 0x210   :  { %2368 = vmatmul.mubr.msk.f32.vlgmr.msra.gmra.mxu1 %vm163_vm3, %v2453_v44 }
 0x211   :  { %2376 = vmatpush3.msra.mxu1 %v1098_v43  ;;  %2377 = vmatprep.mubr.msk.f32.mxu1 %vm2602_vm5, %v2601_v38 }
 0x212   :  { %2388 = vmatprep.subr.mxu1 %v1269_v45 }
 0x214   :  { %2378 = vmatmul.mubr.msk.f32.vlgmr.msra.gmra.mxu1 %vm482_vm6, %v1025_v33 }
 0x215   :  { %2389 = vmatpush3.msra.mxu1 %v1269_v45 }
 0x216   :  { %2404 = vmatprep.subr.mxu1 %v2601_v38 }
 0x2b8   :  { %v753_v49 = vpop.f32.mrf.mxu0 }
 0x2b9   :  { %v844_v54 = vrot.slane %v753_v49, %v2843_v26 }
 0x2ba   :  { %v2364_v50 = vpop.f32.mrf.mxu0 }
 0x2bb   :  { %v845_v55 = vcombine.high %v844_v54, %v844_v54  ;;  %v852_v57 = vrot.slane %v844_v54, %v2843_v26  ;;  %v2234_v54 = vld [vmem:[#allocation9] ss:$0 sm:$0xff] }
 0x2bc   :  { %v2874_v51 = vpop.f32.mrf.mxu0 }
 0x2bd   :  { %v859_v60 = vrot.slane %v845_v55, %v2843_v26  ;;  %v863_v3 = vrot.slane %v852_v57, %v2878_v59  ;;  %v1095_v57 = vadd.f32 %v2234_v54, %v2874_v51 }
 0x2be   :  { %v2374_v53 = vpop.f32.mrf.mxu0 }
 0x2bf   :  { %v867_v7 = vrot.slane %v859_v60, %v2878_v59  ;;  %v870_v12 = vsub.f32 %v2798_v58, %v863_v3  ;;  %v871_v14 = vsub.f32 %v2794_v52, %v863_v3  ;;  %v2236_v60 = vld [vmem:[%s3068_s9] ss:$0 sm:$0xff] }
 0x2c1   :  { %v872_v17 = vsub.f32 %v2812_v13, %v867_v7  ;;  %v873_v19 = vsub.f32 %v2806_v0, %v867_v7 }
 0x2d0   :  { %v826_v61 = vpop.f32.mrf.mxu1 }
 0x2d1   :  { %v836_v62 = vmul.f32 %v2226_v56, %v826_v61 }
 0x2d2   :  { %v2369_v63 = vpop.f32.mrf.mxu1 }
 0x2d3   :  { %v881_v4 = vrot.slane %v836_v62, %v2843_v26  ;;  %v1183_v62 = vrot.slane %v1095_v57, %v2843_v26 }
 0x2d4   :  { %v1172_v8 = vpop.f32.mrf.mxu1 }
 0x2d5   :  { %v882_v9 = vcombine.high %v881_v4, %v881_v4  ;;  %v889_v10 = vrot.slane %v881_v4, %v2843_v26  ;;  %v1173_v61 = vadd.f32 %v2236_v60, %v1172_v8  ;;  %v1184_v3 = vcombine.high %v1183_v62, %v1183_v62 }
 0x2d6   :  { %v2379_v11 = vpop.f32.mrf.mxu1  ;;  %v1191_v7 = vrot.slane %v1183_v62, %v2843_v26 }
 0x2d7   :  { %v896_v15 = vrot.slane %v882_v9, %v2843_v26  ;;  %v900_v16 = vrot.slane %v889_v10, %v2878_v59  ;;  %v1220_v63 = vrot.slane %v1173_v61, %v2843_v26 }
 0x2d9   :  { %v904_v20 = vrot.slane %v896_v15, %v2878_v59  ;;  %v907_v21 = vmul.f32 %v900_v16, %v870_v12  ;;  %v908_v22 = vmul.f32 %v900_v16, %v871_v14  ;;  %v1221_v10 = vcombine.high %v1220_v63, %v1220_v63 }
 0x2da   :  { %v1198_v16 = vrot.slane %v1184_v3, %v2843_v26  ;;  %v1228_v8 = vrot.slane %v1220_v63, %v2843_v26 }
 0x2db   :  { %v909_v23 = vmul.f32 %v904_v20, %v872_v17  ;;  %v910_v24 = vmul.f32 %v904_v20, %v873_v19  ;;  %v2892_v25 = vadd.f32 %v2227_v18, %v907_v21  ;;  %v2894_v58 = vadd.f32 %v2227_v18, %v908_v22 }
 0x2dd   :  { %v2896_v52 = vadd.f32 %v2227_v18, %v909_v23  ;;  %v2898_v27 = vadd.f32 %v2227_v18, %v910_v24  ;;  %v921_v28 = vmin.f32 %v2892_v25, 30.0  ;;  %v922_v13 = vmin.f32 %v2894_v58, 30.0 }
 0x2de   :  { %v1202_v24 = vrot.slane %v1191_v7, %v2878_v59 }
 0x2df   :  { %v923_v0 = vmin.f32 %v2896_v52, 30.0  ;;  %v924_v29 = vmin.f32 %v2898_v27, 30.0  ;;  %v925_v30 = vmul.f32 1.442695, %v921_v28  ;;  %v927_v31 = vmul.f32 1.442695, %v922_v13 }
 0x2e0   :  { %v1235_v28 = vrot.slane %v1221_v10, %v2843_v26 }
 0x2e1   :  { %2454 = vpow2.f32 %v925_v30  ;;  %v929_v32 = vmul.f32 1.442695, %v923_v0  ;;  %v931_v33 = vmul.f32 1.442695, %v924_v29 }
 0x2e2   :  { %2456 = vpow2.f32 %v927_v31 }
 0x2e3   :  { %2458 = vpow2.f32 %v929_v32 }
 0x2e4   :  { %2460 = vpow2.f32 %v931_v33  ;;  %v1206_v33 = vrot.slane %v1198_v16, %v2878_v59 }
 0x2ee   :  { %v2455_v34 = vpop.eup %2454 }
 0x2ef   :  { %v2457_v35 = vpop.eup %2456  ;;  %v933_v36 = vadd.f32 1.0, %v2455_v34  ;;  %v1239_v34 = vrot.slane %v1228_v8, %v2878_v59 }
 0x2f0   :  { %v2459_v39 = vpop.eup %2458  ;;  %v934_v40 = vadd.f32 1.0, %v2457_v35 }
 0x2f1   :  { %v2461_v41 = vpop.eup %2460  ;;  %v937_v42 = vmul.f32 %v933_v36, %v933_v36  ;;  %v935_v43 = vadd.f32 1.0, %v2459_v39 }
 0x2f2   :  { %v936_v44 = vadd.f32 1.0, %v2461_v41  ;;  %v938_v45 = vmul.f32 %v934_v40, %v934_v40 }
 0x2f3   :  { %v941_v46 = vadd.f32 1.0, %v937_v42  ;;  %v939_v49 = vmul.f32 %v935_v43, %v935_v43  ;;  %v2228_v12 = vadd.f32 -1.0, %v937_v42 }
 0x2f4   :  { %v940_v50 = vmul.f32 %v936_v44, %v936_v44  ;;  %v942_v53 = vadd.f32 1.0, %v938_v45  ;;  %v2229_v51 = vadd.f32 -1.0, %v938_v45 }
 0x2f5   :  { %2462 = vrcp.f32 %v941_v46  ;;  %v943_v55 = vadd.f32 1.0, %v939_v49  ;;  %v2230_v20 = vadd.f32 -1.0, %v939_v49  ;;  %v965_v0 = vmul.f32 %v2228_v12, %v2892_v25 }
 0x2f6   :  { %v944_v56 = vadd.f32 1.0, %v940_v50  ;;  %2464 = vrcp.f32 %v942_v53  ;;  %v2231_v23 = vadd.f32 -1.0, %v940_v50  ;;  %v966_v32 = vmul.f32 %v2229_v51, %v2894_v58 }
 0x2f7   :  { %2466 = vrcp.f32 %v943_v55  ;;  %v967_v39 = vmul.f32 %v2230_v20, %v2896_v52  ;;  %v1243_v25 = vrot.slane %v1235_v28, %v2878_v59 }
 0x2f8   :  { %2468 = vrcp.f32 %v944_v56  ;;  %v968_v41 = vmul.f32 %v2231_v23, %v2898_v27 }
 0x302   :  { %v2463_v4 = vpop.eup %2462 }
 0x303   :  { %v2465_v9 = vpop.eup %2464  ;;  %v949_v11 = vmul.f32 %v2463_v4, %v941_v46 }
 0x304   :  { %v2467_v14 = vpop.eup %2466  ;;  %v950_v15 = vmul.f32 %v2465_v9, %v942_v53 }
 0x305   :  { %v2469_v17 = vpop.eup %2468  ;;  %v953_v18 = vsub.f32 2.0, %v949_v11  ;;  %v951_v19 = vmul.f32 %v2467_v14, %v943_v55 }
 0x306   :  { %v952_v21 = vmul.f32 %v2469_v17, %v944_v56  ;;  %v954_v22 = vsub.f32 2.0, %v950_v15 }
 0x307   :  { %v957_v13 = vmul.f32 %v2463_v4, %v953_v18  ;;  %v955_v29 = vsub.f32 2.0, %v951_v19 }
 0x308   :  { %v956_v30 = vsub.f32 2.0, %v952_v21  ;;  %v958_v31 = vmul.f32 %v2465_v9, %v954_v22 }
 0x309   :  { %v969_v35 = vmul.f32 %v965_v0, %v957_v13  ;;  %v959_v36 = vmul.f32 %v2467_v14, %v955_v29 }
 0x30a   :  { %v960_v40 = vmul.f32 %v2469_v17, %v956_v30  ;;  %v970_v42 = vmul.f32 %v966_v32, %v958_v31 }
 0x30b   :  { %v1209_v43 = vmul.f32 %v1202_v24, %v969_v35  ;;  %v971_v44 = vmul.f32 %v967_v39, %v959_v36 }
 0x30c   :  { %v972_v45 = vmul.f32 %v968_v41, %v960_v40  ;;  %v1210_v46 = vmul.f32 %v1202_v24, %v970_v42 }
 0x30d   :  { %v1246_v49 = vadd.f32 %v1239_v34, %v1209_v43  ;;  %v1211_v58 = vmul.f32 %v1206_v33, %v971_v44 }
 0x30e   :  { %v1212_v50 = vmul.f32 %v1206_v33, %v972_v45  ;;  %v1247_v53 = vadd.f32 %v1239_v34, %v1210_v46  ;;  %v2252_v34 = vld [vmem:[%s3070_s11] ss:$0 sm:$0xff] }
 0x30f   :  { %v1255_v54 = vrot.slane %v1246_v49, 7  ;;  %v1248_v55 = vadd.f32 %v1243_v25, %v1211_v58 }
 0x310   :  { %v1256_v56 = vrot.slane %v1247_v53, 7  ;;  %v1249_v57 = vadd.f32 %v1243_v25, %v1212_v50 }
 0x311   :  { %v1265_v52 = vsel %vm130_vm1, 0.0, %v1255_v54  ;;  %v1258_v60 = vrot.slane %v1248_v55, 7 }
 0x312   :  { %v1267_v27 = vsel %vm130_vm1, %v1256_v56, 0.0  ;;  %v1274_v61 = vrot.slane %v1265_v52, 1  ;;  %2390 = vmatprep.mubr.msk.f32.mxu1 %vm482_vm6, %v1265_v52  ;;  %v1257_v62 = vsel %vm130_vm1, %v1255_v54, %v1256_v56  ;;  %v1259_v63 = vrot.slane %v1249_v57, 7 }
 0x313   :  { %2391 = vmatmul.mubr.msk.f32.vlgmr.msra.gmra.mxu1 %vm482_vm6, %v1257_v62  ;;  %v1266_v3 = vsel %vm130_vm1, 0.0, %v1258_v60  ;;  %v1275_v4 = vrot.slane %v1257_v62, 1  ;;  %v1277_v9 = vrot.slane %v1267_v27, 1  ;;  %v1472_v16 = vrot.slane %v1265_v52, 2 }
 0x314   :  { %v1279_v7 = vrot.slane %v1266_v3, 1  ;;  %2393 = vmatprep.mubr.msk.f32.mxu1 %vm482_vm6, %v1266_v3  ;;  %2405 = vmatpush3.msra.mxu1 %v2784_v37  ;;  %v1260_v10 = vsel %vm130_vm1, %v1258_v60, %v1259_v63  ;;  %v1268_v12 = vsel %vm130_vm1, %v1259_v63, 0.0  ;;  %v1473_v17 = vrot.slane %v1257_v62, 2 }
 0x315   :  { %v1276_v11 = vsel %vm150_vm2, %v1274_v61, %v1275_v4  ;;  %2409 = vmatprep.subr.mxu1 %v2601_v38  ;;  %v1278_v14 = vsel %vm150_vm2, %v1275_v4, %v1277_v9  ;;  %v1280_v15 = vrot.slane %v1260_v10, 1  ;;  %v1282_v51 = vrot.slane %v1268_v12, 1 }
 0x316   :  { %2382 = vmatprep.mubr.msk.f32.mxu0 %vm482_vm6, %v1276_v11  ;;  %v1475_v18 = vrot.slane %v1267_v27, 2  ;;  %v1477_v20 = vrot.slane %v1266_v3, 2  ;;  %v1474_v21 = vsel %vm357_vm4, %v1472_v16, %v1473_v17  ;;  %v1478_v22 = vrot.slane %v1260_v10, 2 }
 0x317   :  { %2383 = vmatmul.mubr.msk.f32.vlgmr.msra.gmra.mxu0 %vm482_vm6, %v1278_v14  ;;  %2394 = vmatmul.mubr.msk.f32.gmra.mxu1 %vm482_vm6, %v1260_v10  ;;  %v1281_v8 = vsel %vm150_vm2, %v1279_v7, %v1280_v15  ;;  %v1283_v19 = vsel %vm150_vm2, %v1280_v15, %v1282_v51  ;;  %v1480_v23 = vrot.slane %v1268_v12, 2 }
 0x318   :  { %2397 = vmatpush3.msra.mxu0 %v2871_v47  ;;  %2406 = vmatprep.mubr.msk.f32.mxu1 %vm2602_vm5, %v2601_v38  ;;  %v1476_v47 = vsel %vm357_vm4, %v1473_v17, %v1475_v18  ;;  %v1479_v24 = vsel %vm357_vm4, %v1477_v20, %v1478_v22 }
 0x319   :  { %2385 = vmatprep.mubr.msk.f32.mxu0 %vm482_vm6, %v1281_v8  ;;  %2414 = vmatprep.subr.mxu0 %v2601_v38  ;;  %v1481_v28 = vsel %vm357_vm4, %v1478_v22, %v1480_v23 }
 0x31b   :  { %2386 = vmatmul.mubr.msk.f32.gmra.mxu0 %vm482_vm6, %v1283_v19 }
 0x31c   :  { %2398 = vmatprep.mubr.msk.f32.mxu0 %vm482_vm6, %v1474_v21 }
 0x31f   :  { %2399 = vmatmul.mubr.msk.f32.vlgmr.msra.gmra.mxu0 %vm482_vm6, %v1476_v47 }
 0x320   :  { %2401 = vmatprep.mubr.msk.f32.mxu0 %vm482_vm6, %v1479_v24  ;;  %2415 = vmatpush3.msk.msra.mxu0 %vm172_vm0, %v2835_v48 }
 0x323   :  { %2402 = vmatmul.mubr.msk.f32.gmra.mxu0 %vm482_vm6, %v1481_v28 }
 0x324   :  { %2416 = vmatprep.mubr.msk.f32.mxu0 %vm2602_vm5, %v2601_v38 }
 0x3d3   :  { %v2392_v0 = vpop.f32.mrf.mxu1 }
 0x3d5   :  { %v1453_v31 = vpop.f32.mrf.mxu1 }
 0x3d7   :  { %v2384_v13 = vpop.f32.mrf.mxu0  ;;  %v2395_v36 = vpop.f32.mrf.mxu1 }
 0x3d8   :  { %v1459_v33 = vadd.f32 %v2392_v0, %v2384_v13 }
 0x3d9   :  { %v1360_v29 = vpop.f32.mrf.mxu0  ;;  %v1463_v45 = vpop.f32.mrf.mxu1 }
 0x3da   :  { %v1454_v39 = vadd.f32 %v1453_v31, %v1360_v29 }
 0x3db   :  { %v2387_v30 = vpop.f32.mrf.mxu0 }
 0x3dc   :  { %v1469_v42 = vadd.f32 %v2395_v36, %v2387_v30 }
 0x3dd   :  { %v1370_v32 = vpop.f32.mrf.mxu0 }
 0x3de   :  { %v1464_v50 = vadd.f32 %v1463_v45, %v1370_v32 }
 0x3df   :  { %v2400_v35 = vpop.f32.mrf.mxu0 }
 0x3e0   :  { %v1578_v40 = vadd.f32 %v2400_v35, %v1459_v33 }
 0x3e1   :  { %v1558_v41 = vpop.f32.mrf.mxu0 }
 0x3e2   :  { %v2961_v43 = vadd.f32 %v2252_v34, %v1578_v40  ;;  %v1577_v44 = vadd.f32 %v1558_v41, %v1454_v39 }
 0x3e3   :  { %v2403_v25 = vpop.f32.mrf.mxu0 }
 0x3e4   :  { %v1612_v46 = vmul.f32 %v2961_v43, %v2961_v43  ;;  %v2965_v49 = vadd.f32 %v2252_v34, %v1577_v44  ;;  %v1580_v58 = vadd.f32 %v2403_v25, %v1469_v42  ;;  %v1594_v54 = vsel %vm482_vm6, %v2961_v43, 0.0 }
 0x3e5   :  { %v1568_v53 = vpop.f32.mrf.mxu0 }
 0x3e6   :  { %v1593_v55 = vsel %vm482_vm6, %v2965_v49, 0.0  ;;  %v1611_v56 = vmul.f32 %v2965_v49, %v2965_v49  ;;  %v2973_v57 = vadd.f32 %v2252_v34, %v1580_v58  ;;  %v1579_v60 = vadd.f32 %v1568_v53, %v1464_v50 }
 0x3e7   :  { %v1595_v52 = vadd.f32 %v1594_v54, %v1593_v55  ;;  %v1616_v27 = vsel %vm482_vm6, %v1612_v46, 0.0 }
 0x3e8   :  { %v1615_v61 = vsel %vm482_vm6, %v1611_v56, 0.0  ;;  %v1614_v3 = vmul.f32 %v2973_v57, %v2973_v57  ;;  %v2979_v4 = vadd.f32 %v2252_v34, %v1579_v60  ;;  %v1603_v7 = vsel %vm482_vm6, %v2973_v57, 0.0 }
 0x3e9   :  { %v1596_v62 = vrot.slane %v1595_v52, 4  ;;  %v1617_v63 = vadd.f32 %v1616_v27, %v1615_v61 }
 0x3ea   :  { %v1602_v11 = vsel %vm482_vm6, %v2979_v4, 0.0  ;;  %v1613_v12 = vmul.f32 %v2979_v4, %v2979_v4  ;;  %v1625_v16 = vsel %vm482_vm6, %v1614_v3, 0.0 }
 0x3eb   :  { %v1597_v9 = vadd.f32 %v1596_v62, %v1595_v52  ;;  %v1618_v10 = vrot.slane %v1617_v63, 4  ;;  %v1604_v14 = vadd.f32 %v1603_v7, %v1602_v11 }
 0x3ec   :  { %v1624_v17 = vsel %vm482_vm6, %v1613_v12, 0.0 }
 0x3ed   :  { %v1598_v15 = vrot.slane %v1597_v9, 2  ;;  %v1619_v51 = vadd.f32 %v1618_v10, %v1617_v63  ;;  %v1605_v8 = vrot.slane %v1604_v14, 4  ;;  %v1626_v18 = vadd.f32 %v1625_v16, %v1624_v17 }
 0x3ef   :  { %v1599_v19 = vadd.f32 %v1598_v15, %v1597_v9  ;;  %v1620_v20 = vrot.slane %v1619_v51, 2  ;;  %v1606_v21 = vadd.f32 %v1605_v8, %v1604_v14  ;;  %v1627_v22 = vrot.slane %v1626_v18, 4  ;;  %v2260_v15 = vld [vmem:[%s3072_s13] ss:$0 sm:$0xff] }
 0x3f1   :  { %v1607_v47 = vrot.slane %v1606_v21, 2  ;;  %v1628_v23 = vadd.f32 %v1627_v22, %v1626_v18  ;;  %v1600_v24 = vrot.slane %v1599_v19, 1  ;;  %v1621_v0 = vadd.f32 %v1620_v20, %v1619_v51 }
 0x3f3   :  { %v1608_v28 = vadd.f32 %v1607_v47, %v1606_v21  ;;  %v1629_v13 = vrot.slane %v1628_v23, 2  ;;  %v1601_v31 = vadd.f32 %v1600_v24, %v1599_v19  ;;  %v1622_v33 = vrot.slane %v1621_v0, 1 }
 0x3f5   :  { %v1609_v29 = vrot.slane %v1608_v28, 1  ;;  %v1630_v30 = vadd.f32 %v1629_v13, %v1628_v23  ;;  %v1623_v39 = vadd.f32 %v1622_v33, %v1621_v0 }
 0x3f7   :  { %v1610_v32 = vadd.f32 %v1609_v29, %v1608_v28  ;;  %v1631_v34 = vrot.slane %v1630_v30, 1 }
 0x3f9   :  { %v1635_v35 = vsel %vm525_vm7, %v1610_v32, %v1601_v31  ;;  %v1632_v36 = vadd.f32 %v1631_v34, %v1630_v30 }
 0x3fa   :  { %2407 = vmatmul.mubr.msk.f32.vlgmr.msra.gmra.mxu1 %vm482_vm6, %v1635_v35 }
 0x3fb   :  { %2410 = vmatpush3.msra.mxu1 %v2784_v37  ;;  %2411 = vmatprep.mubr.msk.f32.mxu1 %vm2602_vm5, %v2601_v38  ;;  %v1711_v40 = vsel %vm525_vm7, %v1632_v36, %v1623_v39  ;;  %v2079_v37 = vld [vmem:[%s3073_s14] sm:$0xf] }
 0x3fc   :  { %2419 = vmatprep.subr.mxu1 %v2601_v38  ;;  %2424 = vmatprep.subr.msk.mxu0 %vm172_vm0, %v2079_v37 }
 0x3fe   :  { %2412 = vmatmul.mubr.msk.f32.vlgmr.msra.gmra.mxu1 %vm482_vm6, %v1711_v40 }
 0x3ff   :  { %2420 = vmatpush3.msk.msra.mxu1 %vm172_vm0, %v2835_v48  ;;  %2421 = vmatprep.mubr.msk.f32.mxu1 %vm2602_vm5, %v2601_v38 }
 0x4ba   :  { %v1704_v41 = vpop.f32.mrf.mxu1 }
 0x4bb   :  { %v1708_v42 = vmul.f32 0.03125, %v1704_v41 }
 0x4bc   :  { %v2408_v44 = vpop.f32.mrf.mxu1 }
 0x4bd   :  { %2417 = vmatmul.mubr.msk.f32.vlgmr.msra.gmra.mxu0 %vm163_vm3, %v1708_v42  ;;  %v1785_v48 = vmul.f32 %v1708_v42, %v1708_v42 }
 0x4be   :  { %v1780_v25 = vpop.f32.mrf.mxu1  ;;  %2425 = vmatpush3.msk.msra.mxu0 %vm172_vm0, %v2079_v37  ;;  %2426 = vmatprep.mubr.msk.f32.mxu0 %vm163_vm3, %v2720_v1 }
 0x4bf   :  { %v1784_v45 = vmul.f32 0.03125, %v1780_v25 }
 0x4c0   :  { %v2413_v38 = vpop.f32.mrf.mxu1 }
 0x4c1   :  { %v1786_v46 = vsub.f32 %v1784_v45, %v1785_v48  ;;  %2427 = vmatmul.mubr.msk.f32.vlgmr.msra.gmra.mxu0 %vm163_vm3, %v2725_v2  ;;  %v2259_v2 = vld [vmem:[%s3071_s12] ss:$0 sm:$0xff] }
 0x4c2   :  { %2429 = vmatprep.mubr.msk.f32.mxu0 %vm163_vm3, %v2734_v5 }
 0x4c3   :  { %v1787_v58 = vmax.f32 %v1786_v46, 0.0 }
 0x4c5   :  { %v1788_v50 = vadd.f32 1e-05, %v1787_v58  ;;  %2430 = vmatmul.mubr.msk.f32.gmra.mxu0 %vm163_vm3, %v2739_v6 }
 0x4c7   :  { %2470 = vrsqrt.f32 %v1788_v50 }
 0x4d4   :  { %v2471_v53 = vpop.eup %2470 }
 0x4d5   :  { %2422 = vmatmul.mubr.msk.f32.vlgmr.msra.gmra.mxu1 %vm163_vm3, %v2471_v53 }
 0x57d   :  { %v1859_v1 = vpop.f32.mrf.mxu0 }
 0x57e   :  { %v1950_v55 = vrot.slane %v1859_v1, %v2843_v26 }
 0x57f   :  { %v2418_v54 = vpop.f32.mrf.mxu0 }
 0x580   :  { %v1951_v56 = vcombine.high %v1950_v55, %v1950_v55  ;;  %v1958_v5 = vrot.slane %v1950_v55, %v2843_v26 }
 0x581   :  { %v2428_v44 = vpop.f32.mrf.mxu0 }
 0x582   :  { %v1965_v52 = vrot.slane %v1951_v56, %v2843_v26  ;;  %v1969_v61 = vrot.slane %v1958_v5, %v2878_v59  ;;  %v2270_v5 = vld [vmem:[%s3074_s15] ss:$0 sm:$0xff] }
 0x583   :  { %v2157_v25 = vpop.f32.mrf.mxu0 }
 0x584   :  { %v1973_v63 = vrot.slane %v1965_v52, %v2878_v59  ;;  %v1976_v9 = vsub.f32 %v2965_v49, %v1969_v61  ;;  %v1977_v10 = vsub.f32 %v2961_v43, %v1969_v61 }
 0x586   :  { %v1978_v14 = vsub.f32 %v2979_v4, %v1973_v63  ;;  %v1979_v51 = vsub.f32 %v2973_v57, %v1973_v63 }
 0x595   :  { %v1932_v60 = vpop.f32.mrf.mxu1 }
 0x596   :  { %v1942_v27 = vmul.f32 %v2259_v2, %v1932_v60  ;;  %v2431_v2 = vpop.f32.mrf.mxu0 }
 0x597   :  { %v2423_v6 = vpop.f32.mrf.mxu1 }
 0x598   :  { %v1987_v62 = vrot.slane %v1942_v27, %v2843_v26 }
 0x59a   :  { %v1988_v3 = vcombine.high %v1987_v62, %v1987_v62  ;;  %v1995_v7 = vrot.slane %v1987_v62, %v2843_v26 }
 0x59c   :  { %v2002_v11 = vrot.slane %v1988_v3, %v2843_v26  ;;  %v2006_v12 = vrot.slane %v1995_v7, %v2878_v59 }
 0x59e   :  { %v2010_v16 = vrot.slane %v2002_v11, %v2878_v59  ;;  %v2013_v17 = vmul.f32 %v2006_v12, %v1976_v9  ;;  %v2014_v8 = vmul.f32 %v2006_v12, %v1977_v10  ;;  %v2184_v10 = vadd.f32 %v2428_v44, %v2270_v5 }
 0x5a0   :  { %v2024_v18 = vadd.f32 %v2260_v15, %v2014_v8  ;;  %v2023_v49 = vadd.f32 %v2260_v15, %v2013_v17  ;;  %v2016_v19 = vmul.f32 %v2010_v16, %v1979_v51  ;;  %v2015_v43 = vmul.f32 %v2010_v16, %v1978_v14  ;;  %v2167_v14 = vpop.f32.mrf.mxu0 }
 0x5a1   :  { %v2183_v51 = vadd.f32 %v2270_v5, %v2157_v25 }
 0x5a2   :  { %v2028_v20 = vmin.f32 %v2024_v18, 30.0  ;;  %v2027_v26 = vmin.f32 %v2023_v49, 30.0  ;;  %v2026_v21 = vadd.f32 %v2260_v15, %v2016_v19  ;;  %v3036_v22 = vadd.f32 %v2260_v15, %v2015_v43 }
 0x5a3   :  { %v2186_v43 = vadd.f32 %v2431_v2, %v2270_v5 }
 0x5a4   :  { %v2033_v4 = vmul.f32 1.442695, %v2028_v20  ;;  %v2031_v47 = vmul.f32 1.442695, %v2027_v26  ;;  %v2030_v23 = vmin.f32 %v2026_v21, 30.0  ;;  %v2029_v24 = vmin.f32 %v3036_v22, 30.0 }
 0x5a6   :  { %2472 = vpow2.f32 %v2033_v4  ;;  %v2037_v57 = vmul.f32 1.442695, %v2030_v23  ;;  %v2035_v28 = vmul.f32 1.442695, %v2029_v24 }
 0x5a7   :  { %2474 = vpow2.f32 %v2031_v47 }
 0x5a8   :  { %2476 = vpow2.f32 %v2037_v57 }
 0x5a9   :  { %2478 = vpow2.f32 %v2035_v28 }
 0x5b3   :  { %v2473_v59 = vpop.eup %2472 }
 0x5b4   :  { %v2475_v13 = vpop.eup %2474  ;;  %v2040_v0 = vadd.f32 1.0, %v2473_v59 }
 0x5b5   :  { %v2477_v29 = vpop.eup %2476  ;;  %v2039_v30 = vadd.f32 1.0, %v2475_v13 }
 0x5b6   :  { %v2479_v31 = vpop.eup %2478  ;;  %v2044_v32 = vmul.f32 %v2040_v0, %v2040_v0  ;;  %v2042_v33 = vadd.f32 1.0, %v2477_v29 }
 0x5b7   :  { %v2043_v34 = vmul.f32 %v2039_v30, %v2039_v30  ;;  %v2041_v35 = vadd.f32 1.0, %v2479_v31 }
 0x5b8   :  { %v2048_v36 = vadd.f32 1.0, %v2044_v32  ;;  %v2046_v39 = vmul.f32 %v2042_v33, %v2042_v33  ;;  %v2262_v46 = vadd.f32 -1.0, %v2044_v32 }
 0x5b9   :  { %v2047_v40 = vadd.f32 1.0, %v2043_v34  ;;  %v2045_v37 = vmul.f32 %v2041_v35, %v2041_v35  ;;  %v2261_v53 = vadd.f32 -1.0, %v2043_v34 }
 0x5ba   :  { %2480 = vrcp.f32 %v2048_v36  ;;  %v2050_v41 = vadd.f32 1.0, %v2046_v39  ;;  %v2264_v56 = vadd.f32 -1.0, %v2046_v39  ;;  %v2072_v61 = vmul.f32 %v2262_v46, %v2024_v18 }
 0x5bb   :  { %2482 = vrcp.f32 %v2047_v40  ;;  %v2049_v42 = vadd.f32 1.0, %v2045_v37  ;;  %v2263_v27 = vadd.f32 -1.0, %v2045_v37  ;;  %v2071_v3 = vmul.f32 %v2261_v53, %v2023_v49 }
 0x5bc   :  { %2484 = vrcp.f32 %v2050_v41  ;;  %v2074_v12 = vmul.f32 %v2264_v56, %v2026_v21  ;;  %v2185_v18 = vadd.f32 %v2270_v5, %v2167_v14 }
 0x5bd   :  { %2486 = vrcp.f32 %v2049_v42  ;;  %v2073_v17 = vmul.f32 %v2263_v27, %v3036_v22 }
 0x5c7   :  { %v2481_v48 = vpop.eup %2480 }
 0x5c8   :  { %v2483_v45 = vpop.eup %2482  ;;  %v2056_v38 = vmul.f32 %v2481_v48, %v2048_v36 }
 0x5c9   :  { %v2485_v58 = vpop.eup %2484  ;;  %v2055_v50 = vmul.f32 %v2483_v45, %v2047_v40 }
 0x5ca   :  { %v2487_v1 = vpop.eup %2486  ;;  %v2060_v54 = vsub.f32 2.0, %v2056_v38  ;;  %v2058_v55 = vmul.f32 %v2485_v58, %v2050_v41 }
 0x5cb   :  { %v2059_v52 = vsub.f32 2.0, %v2055_v50  ;;  %v2057_v60 = vmul.f32 %v2487_v1, %v2049_v42 }
 0x5cc   :  { %v2064_v6 = vmul.f32 %v2481_v48, %v2060_v54  ;;  %v2062_v62 = vsub.f32 2.0, %v2058_v55 }
 0x5cd   :  { %v2063_v63 = vmul.f32 %v2483_v45, %v2059_v52  ;;  %v2061_v7 = vsub.f32 2.0, %v2057_v60 }
 0x5ce   :  { %v2076_v9 = vmul.f32 %v2072_v61, %v2064_v6  ;;  %v2066_v11 = vmul.f32 %v2485_v58, %v2062_v62 }
 0x5cf   :  { %v2075_v15 = vmul.f32 %v2071_v3, %v2063_v63  ;;  %v2065_v16 = vmul.f32 %v2487_v1, %v2061_v7 }
 0x5d0   :  { %v2188_v8 = vadd.f32 %v2184_v10, %v2076_v9  ;;  %v2078_v19 = vmul.f32 %v2074_v12, %v2066_v11 }
 0x5d1   :  { %v2187_v20 = vadd.f32 %v2183_v51, %v2075_v15  ;;  %v2077_v26 = vmul.f32 %v2073_v17, %v2065_v16 }
 0x5d2   :  { %2192 = vst.msk [vmem:[%s3077_s18 + $0x8] sm:$0xff] %vm482_vm6, %v2188_v8  ;;  %v2190_v49 = vadd.f32 %v2186_v43, %v2078_v19 }
 0x5d3   :  { %2191 = vst.msk [vmem:[%s3077_s18] sm:$0xff] %vm482_vm6, %v2187_v20  ;;  %v2189_v21 = vadd.f32 %v2185_v18, %v2077_v26 }
 0x5d4   :  { %2194 = vst.msk [vmem:[%s3077_s18 + $0x18] sm:$0xff] %vm482_vm6, %v2190_v49 }
 0x5d5   :  { %2193 = vst.msk [vmem:[%s3077_s18 + $0x10] sm:$0xff] %vm482_vm6, %v2189_v21 }
 0x5d6   :  { %2199 = vsyncpa [#allocation3], 1 }
 0x5d7   :  { %2200 = vsyncpa [#allocation5], 1 }
 0x5d8   :  { %2201 = vsyncpa [#allocation8], 1 }

</bundles_post_ra>
